<compile_context>
chip_gen: v5e
topology: v5e:2x2
jax: 0.10.0
libtpu: 0.0.40
codegen_flags: <defaults>
</compile_context>

<pallas_src>
import functools

import numpy as np
import jax
import jax.numpy as jnp
from jax.experimental import pallas as pl
from jax.experimental.pallas import tpu as pltpu


# ----------------------------------------------------------------------------------------
# helpers
# ----------------------------------------------------------------------------------------
def _round_up(x, m):
    return (x + m - 1) // m * m


def _lanes(c):
    return _round_up(max(int(c), 1), 128)


def _vmem_limit_bytes():
    """Generation-aware scoped-VMEM budget (half of physical, capped), safe fallback."""
    try:
        cap = int(pltpu.get_tpu_info().vmem_capacity_bytes)
        return max(16 * 1024 * 1024, min(cap // 2, 96 * 1024 * 1024))
    except Exception:
        return 32 * 1024 * 1024


def _pick_m_tiling(m):
    """Return (mp, tm): padded row count (multiple of tm) and the M tile size.

    * rounds to 128 (not 256) to cut dead-row waste,
    * keeps >= 2 parallel M blocks whenever mp >= 256 so both v7x TensorCores get work,
    * grows the tile for large M (per-step overhead amortization / HBM roofline).
    """
    if m <= 128:
        mp = _round_up(m, 8)
        return mp, mp
    mp = _round_up(m, 128)
    if mp % 512 == 0 and mp >= 4096:
        return mp, 512
    if mp % 256 == 0 and mp >= 1024:
        return mp, 256
    return mp, 128


# ----------------------------------------------------------------------------------------
# Pallas kernel A: fused reduce 1x1 conv (+ optional projection shortcut 1x1 conv).
#   r  = relu( [relu](x) @ Wr + br )           (bf16 output, feeds the 3x3 conv)
#   sc =        x        @ Wp + bp             (f32 output, residual shortcut; optional)
# Both matmuls read the SAME A tile (one DMA). Single K block -> no scratch, no pl.when.
# ----------------------------------------------------------------------------------------
def _reduce_proj_kernel(*refs, pre_relu, has_proj):
    if has_proj:
        x_ref, wr_ref, br_ref, wp_ref, bp_ref, r_ref, sc_ref = refs
    else:
        x_ref, wr_ref, br_ref, r_ref = refs

    a_raw = x_ref[...]                                        # bf16
    a_act = jnp.maximum(a_raw, 0) if pre_relu else a_raw
    r = jnp.dot(a_act, wr_ref[...], preferred_element_type=jnp.float32) + br_ref[...]
    r_ref[...] = jnp.maximum(r, 0.0).astype(r_ref.dtype)

    if has_proj:
        # projection uses the NON-activated input (matches the PyTorch module)
        sc = jnp.dot(a_raw, wp_ref[...], preferred_element_type=jnp.float32) + bp_ref[...]
        sc_ref[...] = sc.astype(sc_ref.dtype)


def _reduce_and_proj(x_bf, w_r, b_r, w_p, b_p, *, pre_relu, tm, vmem_bytes):
    mp, cip = x_bf.shape
    crp = w_r.shape[1]
    has_proj = w_p is not None

    in_specs = [pl.BlockSpec((tm, cip), lambda i: (i, 0)),
                pl.BlockSpec((cip, crp), lambda i: (0, 0)),
                pl.BlockSpec((1, crp), lambda i: (0, 0))]
    args = [x_bf, w_r, b_r]
    out_shapes = [jax.ShapeDtypeStruct((mp, crp), jnp.bfloat16)]
    out_specs = [pl.BlockSpec((tm, crp), lambda i: (i, 0))]
    if has_proj:
        cop = w_p.shape[1]
        in_specs += [pl.BlockSpec((cip, cop), lambda i: (0, 0)),
                     pl.BlockSpec((1, cop), lambda i: (0, 0))]
        args += [w_p, b_p]
        out_shapes.append(jax.ShapeDtypeStruct((mp, cop), jnp.float32))
        out_specs.append(pl.BlockSpec((tm, cop), lambda i: (i, 0)))

    return pl.pallas_call(
        functools.partial(_reduce_proj_kernel, pre_relu=pre_relu, has_proj=has_proj),
        out_shape=tuple(out_shapes),
        grid=(mp // tm,),
        in_specs=in_specs,
        out_specs=tuple(out_specs),
        compiler_params=pltpu.CompilerParams(
            dimension_semantics=("parallel",), vmem_limit_bytes=vmem_bytes),
    )(*args)


# ----------------------------------------------------------------------------------------
# Pallas kernel B: fused back half.
#   y   = A_im2col @ W3                      (3x3 conv as matmul, conv bias folded in BN)
#   zn  = relu(-y * s_neg + t_neg')          (CReLU negative half, BN folded)
#   zp  = relu( y * s_pos + t_pos')          (CReLU positive half, BN folded)
#   out = [relu]( zn @ We_neg + zp @ We_pos + b_exp ) + shortcut
# Single K block, full output width per M tile -> no scratch, no pl.when.
# ----------------------------------------------------------------------------------------
def _conv3_crelu_expand_kernel(a_ref, w3_ref, sn_ref, tn_ref, sp_ref, tp_ref,
                               wen_ref, wep_ref, be_ref, sc_ref, o_ref, *, last_act):
    y = jnp.dot(a_ref[...], w3_ref[...], preferred_element_type=jnp.float32)
    zn = jnp.maximum(-y * sn_ref[...] + tn_ref[...], 0.0)
    zp = jnp.maximum(y * sp_ref[...] + tp_ref[...], 0.0)
    out = jnp.dot(zn.astype(jnp.bfloat16), wen_ref[...],
                  preferred_element_type=jnp.float32)
    out = out + jnp.dot(zp.astype(jnp.bfloat16), wep_ref[...],
                        preferred_element_type=jnp.float32)
    out = out + be_ref[...]
    if last_act:
        out = jnp.maximum(out, 0.0)
    o_ref[...] = (out + sc_ref[...]).astype(o_ref.dtype)     # residual add stays f32


def _conv3_crelu_expand(a3, w3, s_neg, t_neg, s_pos, t_pos, w_en, w_ep, b_e, sc,
                        *, last_act, tm, vmem_bytes):
    mp, kp = a3.shape
    c3p = w3.shape[1]
    cop = w_en.shape[1]
    vec3 = pl.BlockSpec((1, c3p), lambda i: (0, 0))
    return pl.pallas_call(
        functools.partial(_conv3_crelu_expand_kernel, last_act=last_act),
        out_shape=jax.ShapeDtypeStruct((mp, cop), jnp.float32),
        grid=(mp // tm,),
        in_specs=[pl.BlockSpec((tm, kp), lambda i: (i, 0)),
                  pl.BlockSpec((kp, c3p), lambda i: (0, 0)),
                  vec3, vec3, vec3, vec3,
                  pl.BlockSpec((c3p, cop), lambda i: (0, 0)),
                  pl.BlockSpec((c3p, cop), lambda i: (0, 0)),
                  pl.BlockSpec((1, cop), lambda i: (0, 0)),
                  pl.BlockSpec((tm, cop), lambda i: (i, 0))],
        out_specs=pl.BlockSpec((tm, cop), lambda i: (i, 0)),
        compiler_params=pltpu.CompilerParams(
            dimension_semantics=("parallel",), vmem_limit_bytes=vmem_bytes),
    )(a3, w3, s_neg, t_neg, s_pos, t_pos, w_en, w_ep, b_e, sc)


# ----------------------------------------------------------------------------------------
# mCReLU_residual module (inference semantics).
# ----------------------------------------------------------------------------------------
class MCReLUResidualPallas:
    def __init__(self, key, n_in, n_red, n_3x3, n_out, kernelsize=3, in_stride=1,
                 proj=False, preAct=False, lastAct=True, eps=1e-5):
        if not proj:
            assert in_stride == 1 and n_in == n_out, \
                "identity shortcut requires matching shapes (as in the PyTorch module)"
        self.n_in, self.n_red, self.n_3x3, self.n_out = n_in, n_red, n_3x3, n_out
        self.k, self.stride, self.eps = kernelsize, in_stride, eps
        self.preAct, self.lastAct, self.has_proj = preAct, lastAct, proj

        keys = jax.random.split(key, 12)

        def normal(kk, shape, scl):
            return jax.random.normal(kk, shape, jnp.float32) * scl

        k = kernelsize
        kk2 = k * k
        c2 = 2 * n_3x3
        # raw f32 parameters (HWIO weights) -- also used by the pure-JAX reference
        self.w_reduce = normal(keys[0], (1, 1, n_in, n_red), 0.5 * (2.0 / n_in) ** 0.5)
        self.b_reduce = normal(keys[1], (n_red,), 0.02)
        self.w_conv3 = normal(keys[2], (k, k, n_red, n_3x3),
                              0.5 * (2.0 / (kk2 * n_red)) ** 0.5)
        self.b_conv3 = normal(keys[3], (n_3x3,), 0.02)
        self.bn_gamma = 1.0 + 0.1 * normal(keys[4], (c2,), 1.0)
        self.bn_beta = 0.1 * normal(keys[5], (c2,), 1.0)
        self.bn_mean = 0.1 * normal(keys[6], (c2,), 1.0)
        self.bn_var = 0.5 * jnp.abs(normal(keys[7], (c2,), 1.0)) + 1.0
        self.w_expand = normal(keys[8], (1, 1, c2, n_out), 0.5 * (2.0 / c2) ** 0.5)
        self.b_expand = normal(keys[9], (n_out,), 0.02)
        if proj:
            self.w_proj = normal(keys[10], (1, 1, n_in, n_out), 0.5 * (2.0 / n_in) ** 0.5)
            self.b_proj = normal(keys[11], (n_out,), 0.02)

        # ---- lane-padded, bf16, kernel-ready constants built ONCE ----
        self.CIp, self.CRp = _lanes(n_in), _lanes(n_red)
        self.C3p, self.COp = _lanes(n_3x3), _lanes(n_out)
        self.Kp = _round_up(kk2 * n_red, 128)          # tap-packed tight (not kk2 * CRp)
        assert self.Kp <= 2048 and self.CIp <= 4096, \
            "single-K-block assumption; add a K grid axis for wider layers"

        self.w_reduce_p = (jnp.zeros((self.CIp, self.CRp), jnp.float32)
                           .at[:n_in, :n_red].set(self.w_reduce[0, 0])
                           ).astype(jnp.bfloat16)
        self.b_reduce_p = jnp.zeros((1, self.CRp), jnp.float32).at[0, :n_red].set(self.b_reduce)

        w3 = jnp.zeros((self.Kp, self.C3p), jnp.float32)
        for t in range(kk2):
            ki, kj = divmod(t, k)
            w3 = w3.at[t * n_red:(t + 1) * n_red, :n_3x3].set(self.w_conv3[ki, kj])
        self.w3_p = w3.astype(jnp.bfloat16)

        scale = self.bn_gamma / jnp.sqrt(self.bn_var + eps)
        shift = self.bn_beta - self.bn_mean * scale
        s_neg, s_pos = scale[:n_3x3], scale[n_3x3:]
        t_neg, t_pos = shift[:n_3x3], shift[n_3x3:]
        # cat((-y, y)) with y = conv3 + b3  =>  fold the conv bias into the BN shifts
        self.sn_p = jnp.zeros((1, self.C3p), jnp.float32).at[0, :n_3x3].set(s_neg)
        self.tn_p = (jnp.zeros((1, self.C3p), jnp.float32)
                     .at[0, :n_3x3].set(t_neg - self.b_conv3 * s_neg))
        self.sp_p = jnp.zeros((1, self.C3p), jnp.float32).at[0, :n_3x3].set(s_pos)
        self.tp_p = (jnp.zeros((1, self.C3p), jnp.float32)
                     .at[0, :n_3x3].set(t_pos + self.b_conv3 * s_pos))

        self.w_exp_neg_p = (jnp.zeros((self.C3p, self.COp), jnp.float32)
                            .at[:n_3x3, :n_out].set(self.w_expand[0, 0, :n_3x3, :])
                            ).astype(jnp.bfloat16)
        self.w_exp_pos_p = (jnp.zeros((self.C3p, self.COp), jnp.float32)
                            .at[:n_3x3, :n_out].set(self.w_expand[0, 0, n_3x3:, :])
                            ).astype(jnp.bfloat16)
        self.b_expand_p = jnp.zeros((1, self.COp), jnp.float32).at[0, :n_out].set(self.b_expand)
        if proj:
            self.w_proj_p = (jnp.zeros((self.CIp, self.COp), jnp.float32)
                             .at[:n_in, :n_out].set(self.w_proj[0, 0])
                             ).astype(jnp.bfloat16)
            self.b_proj_p = jnp.zeros((1, self.COp), jnp.float32).at[0, :n_out].set(self.b_proj)

        self._vmem = _vmem_limit_bytes()
        self._fwd = jax.jit(self._forward)          # ONE jit over the entire forward pass

    # ------------------------------------------------------------------------------------
    def _forward(self, x_nchw):
        b, c, h, w = x_nchw.shape
        k, s, p = self.k, self.stride, self.k // 2
        x = jnp.transpose(x_nchw, (0, 2, 3, 1))                 # NCHW -> NHWC (interface glue)
        xs = x[:, ::s, ::s, :] if s > 1 else x                  # 1x1-conv stride == subsample
        ho, wo = xs.shape[1], xs.shape[2]
        m = b * ho * wo
        mp, tm = _pick_m_tiling(m)

        xs_flat = xs.reshape(m, c)
        xs_bf = jnp.pad(xs_flat, ((0, mp - m), (0, self.CIp - c))).astype(jnp.bfloat16)

        # fused reduce (+ proj shortcut) 1x1 convs: one A-tile DMA feeds both matmuls
        if self.has_proj:
            r, sc = _reduce_and_proj(xs_bf, self.w_reduce_p, self.b_reduce_p,
                                     self.w_proj_p, self.b_proj_p,
                                     pre_relu=self.preAct, tm=tm, vmem_bytes=self._vmem)
        else:
            (r,) = _reduce_and_proj(xs_bf, self.w_reduce_p, self.b_reduce_p, None, None,
                                    pre_relu=self.preAct, tm=tm, vmem_bytes=self._vmem)
            # identity shortcut kept in f32 (CIp == COp, padded lanes are zero)
            sc = jnp.pad(xs_flat, ((0, mp - m), (0, self.COp - c)))

        # tap-packed bf16 im2col (K = round_up(k*k*n_red, 128)); one slim relayout pass.
        # TODO(synk): stream the k*k taps via halo DMA for very large feature maps instead.
        r4 = r[:m, :self.n_red].reshape(b, ho, wo, self.n_red)
        rp = jnp.pad(r4, ((0, 0), (p, p), (p, p), (0, 0)))
        cols = [rp[:, ki:ki + ho, kj:kj + wo, :] for ki in range(k) for kj in range(k)]
        a3 = jnp.concatenate(cols, axis=-1).reshape(m, k * k * self.n_red)
        a3 = jnp.pad(a3, ((0, mp - m), (0, self.Kp - k * k * self.n_red)))

        # fused 3x3 conv + CReLU/BN/ReLU + expand + bias + lastAct + residual add
        y = _conv3_crelu_expand(a3, self.w3_p, self.sn_p, self.tn_p, self.sp_p, self.tp_p,
                                self.w_exp_neg_p, self.w_exp_pos_p, self.b_expand_p, sc,
                                last_act=self.lastAct, tm=tm, vmem_bytes=self._vmem)

        y = y[:m, :self.n_out].reshape(b, ho, wo, self.n_out)
        return jnp.transpose(y, (0, 3, 1, 2))                   # NHWC -> NCHW

    def __call__(self, x_nchw):
        return self._fwd(x_nchw)


# ----------------------------------------------------------------------------------------
# pure-JAX reference (mirrors the PyTorch forward, eval-mode BN) for a correctness check
# ----------------------------------------------------------------------------------------
def reference_forward(blk, x_nchw):
    prec = jax.lax.Precision.HIGHEST

    def conv(xx, w_hwio, bias, stride=1, pad=0):
        y = jax.lax.conv_general_dilated(
            xx, w_hwio, (stride, stride), [(pad, pad), (pad, pad)],
            dimension_numbers=("NCHW", "HWIO", "NCHW"), precision=prec)
        return y + bias.reshape(1, -1, 1, 1)

    relu = lambda v: jnp.maximum(v, 0.0)
    x_sc = x_nchw
    x = relu(x_nchw) if blk.preAct else x_nchw
    x = relu(conv(x, blk.w_reduce, blk.b_reduce, stride=blk.stride))
    x = conv(x, blk.w_conv3, blk.b_conv3, pad=blk.k // 2)
    x = jnp.concatenate([-x, x], axis=1)
    scale = blk.bn_gamma / jnp.sqrt(blk.bn_var + blk.eps)
    shift = blk.bn_beta - blk.bn_mean * scale
    x = relu(x * scale.reshape(1, -1, 1, 1) + shift.reshape(1, -1, 1, 1))
    x = conv(x, blk.w_expand, blk.b_expand)
    if blk.lastAct:
        x = relu(x)
    if blk.has_proj:
        x_sc = conv(x_sc, blk.w_proj, blk.b_proj, stride=blk.stride)
    return x + x_sc


# ----------------------------------------------------------------------------------------
if __name__ == "__main__":
    key = jax.random.PRNGKey(0)
    k_x, k_p1, k_p2 = jax.random.split(key, 3)

    B, C, H, W = 2, 32, 16, 16
    x = jax.random.normal(k_x, (B, C, H, W), jnp.float32)       # NCHW, like the PyTorch module

    # tolerance: bf16 MXU operands with f32 accumulation through three matmul stages
    RTOL = ATOL = 3e-2

    # 1) projection-shortcut variant (exercises the fused reduce+proj kernel)
    blk1 = MCReLUResidualPallas(k_p1, n_in=32, n_red=16, n_3x3=16, n_out=64,
                                kernelsize=3, in_stride=1, proj=True,
                                preAct=True, lastAct=True)
    out1 = jax.block_until_ready(blk1(x))
    assert out1.shape == (B, 64, H, W), out1.shape
    assert bool(jnp.all(jnp.isfinite(out1)))
    ref1 = jax.block_until_ready(reference_forward(blk1, x))
    np.testing.assert_allclose(np.asarray(out1), np.asarray(ref1), rtol=RTOL, atol=ATOL)

    # 2) identity-shortcut variant (exercises the reduce-only kernel + f32 identity residual)
    blk2 = MCReLUResidualPallas(k_p2, n_in=32, n_red=16, n_3x3=16, n_out=32,
                                kernelsize=3, in_stride=1, proj=False,
                                preAct=False, lastAct=True)
    out2 = jax.block_until_ready(blk2(x))
    assert out2.shape == (B, 32, H, W), out2.shape
    assert bool(jnp.all(jnp.isfinite(out2)))
    ref2 = jax.block_until_ready(reference_forward(blk2, x))
    np.testing.assert_allclose(np.asarray(out2), np.asarray(ref2), rtol=RTOL, atol=ATOL)

    print("KERNEL_OK")
</pallas_src>

<mosaic_0001>
module attributes {stable_mosaic.version = 11 : i64} {
  func.func @_reduce_proj_kernel(%arg0: i32, %arg1: memref<128x128xbf16, #tpu.memory_space<vmem>>, %arg2: memref<128x128xbf16, #tpu.memory_space<vmem>>, %arg3: memref<1x128xf32, #tpu.memory_space<vmem>>, %arg4: memref<128x128xbf16, #tpu.memory_space<vmem>>, %arg5: memref<1x128xf32, #tpu.memory_space<vmem>>, %arg6: memref<128x128xbf16, #tpu.memory_space<vmem>>, %arg7: memref<128x128xf32, #tpu.memory_space<vmem>>) attributes {dimension_semantics = [#tpu.dimension_semantics<parallel>], iteration_bounds = array<i64: 4>, scalar_prefetch = 0 : i64, scratch_operands = 0 : i64, tpu.core_type = #tpu.core_type<tc>, window_params = [{transform_indices = @transform_0, window_bounds = array<i64: 128, 128>}, {pipeline_mode = #tpu.pipeline_mode<synchronous>, transform_indices = @transform_1, window_bounds = array<i64: 128, 128>}, {pipeline_mode = #tpu.pipeline_mode<synchronous>, transform_indices = @transform_2, window_bounds = array<i64: 1, 128>}, {pipeline_mode = #tpu.pipeline_mode<synchronous>, transform_indices = @transform_3, window_bounds = array<i64: 128, 128>}, {pipeline_mode = #tpu.pipeline_mode<synchronous>, transform_indices = @transform_4, window_bounds = array<i64: 1, 128>}, {transform_indices = @transform_5, window_bounds = array<i64: 128, 128>}, {transform_indices = @transform_6, window_bounds = array<i64: 128, 128>}]} {
    %c0 = arith.constant 0 : index
    %c0_0 = arith.constant 0 : index
    %0 = vector.load %arg1[%c0, %c0_0] : memref<128x128xbf16, #tpu.memory_space<vmem>>, vector<128x128xbf16>
    %cst = arith.constant 0.000000e+00 : bf16
    %1 = vector.broadcast %cst : bf16 to vector<128x128xbf16>
    %2 = arith.maximumf %0, %1 : vector<128x128xbf16>
    %c0_1 = arith.constant 0 : index
    %c0_2 = arith.constant 0 : index
    %3 = vector.load %arg2[%c0_1, %c0_2] : memref<128x128xbf16, #tpu.memory_space<vmem>>, vector<128x128xbf16>
    %cst_3 = arith.constant dense<0.000000e+00> : vector<128x128xf32>
    %4 = tpu.matmul %2, %3, %cst_3 {dimension_numbers = #tpu.dot_dimension_numbers<[1], [0], [0], [1], [0, 0, 1, 1], [], []>} : vector<128x128xbf16>, vector<128x128xbf16>, vector<128x128xf32> -> vector<128x128xf32>
    %c0_4 = arith.constant 0 : index
    %c0_5 = arith.constant 0 : index
    %5 = vector.load %arg3[%c0_4, %c0_5] : memref<1x128xf32, #tpu.memory_space<vmem>>, vector<1x128xf32>
    %6 = vector.broadcast %5 : vector<1x128xf32> to vector<128x128xf32>
    %7 = arith.addf %4, %6 : vector<128x128xf32>
    %cst_6 = arith.constant 0.000000e+00 : f32
    %8 = vector.broadcast %cst_6 : f32 to vector<128x128xf32>
    %9 = arith.maximumf %7, %8 : vector<128x128xf32>
    %10 = arith.truncf %9 : vector<128x128xf32> to vector<128x128xbf16>
    %c0_7 = arith.constant 0 : index
    %c0_8 = arith.constant 0 : index
    %11 = vector.load %arg6[%c0_7, %c0_8] : memref<128x128xbf16, #tpu.memory_space<vmem>>, vector<128x128xbf16>
    tpu.vector_store %arg6[%c0_7, %c0_8], %10 {strides = array<i32>} : memref<128x128xbf16, #tpu.memory_space<vmem>>, vector<128x128xbf16>,
    %c0_9 = arith.constant 0 : index
    %c0_10 = arith.constant 0 : index
    %12 = vector.load %arg4[%c0_9, %c0_10] : memref<128x128xbf16, #tpu.memory_space<vmem>>, vector<128x128xbf16>
    %cst_11 = arith.constant dense<0.000000e+00> : vector<128x128xf32>
    %13 = tpu.matmul %0, %12, %cst_11 {dimension_numbers = #tpu.dot_dimension_numbers<[1], [0], [0], [1], [0, 0, 1, 1], [], []>} : vector<128x128xbf16>, vector<128x128xbf16>, vector<128x128xf32> -> vector<128x128xf32>
    %c0_12 = arith.constant 0 : index
    %c0_13 = arith.constant 0 : index
    %14 = vector.load %arg5[%c0_12, %c0_13] : memref<1x128xf32, #tpu.memory_space<vmem>>, vector<1x128xf32>
    %15 = vector.broadcast %14 : vector<1x128xf32> to vector<128x128xf32>
    %16 = arith.addf %13, %15 : vector<128x128xf32>
    %c0_14 = arith.constant 0 : index
    %c0_15 = arith.constant 0 : index
    %17 = vector.load %arg7[%c0_14, %c0_15] : memref<128x128xf32, #tpu.memory_space<vmem>>, vector<128x128xf32>
    tpu.vector_store %arg7[%c0_14, %c0_15], %16 {strides = array<i32>} : memref<128x128xf32, #tpu.memory_space<vmem>>, vector<128x128xf32>,
    return
  }
  func.func @transform_0(%arg0: i32) -> (i32, i32) {
    %c0_i32 = arith.constant 0 : i32
    %c0_i32_0 = arith.constant 0 : i32
    return %arg0, %c0_i32 : i32, i32
  }
  func.func @transform_1(%arg0: i32) -> (i32, i32) {
    %c0_i32 = arith.constant 0 : i32
    %c0_i32_0 = arith.constant 0 : i32
    %c0_i32_1 = arith.constant 0 : i32
    return %c0_i32, %c0_i32_0 : i32, i32
  }
  func.func @transform_2(%arg0: i32) -> (i32, i32) {
    %c0_i32 = arith.constant 0 : i32
    %c0_i32_0 = arith.constant 0 : i32
    %c0_i32_1 = arith.constant 0 : i32
    return %c0_i32, %c0_i32_0 : i32, i32
  }
  func.func @transform_3(%arg0: i32) -> (i32, i32) {
    %c0_i32 = arith.constant 0 : i32
    %c0_i32_0 = arith.constant 0 : i32
    %c0_i32_1 = arith.constant 0 : i32
    return %c0_i32, %c0_i32_0 : i32, i32
  }
  func.func @transform_4(%arg0: i32) -> (i32, i32) {
    %c0_i32 = arith.constant 0 : i32
    %c0_i32_0 = arith.constant 0 : i32
    %c0_i32_1 = arith.constant 0 : i32
    return %c0_i32, %c0_i32_0 : i32, i32
  }
  func.func @transform_5(%arg0: i32) -> (i32, i32) {
    %c0_i32 = arith.constant 0 : i32
    %c0_i32_0 = arith.constant 0 : i32
    return %arg0, %c0_i32 : i32, i32
  }
  func.func @transform_6(%arg0: i32) -> (i32, i32) {
    %c0_i32 = arith.constant 0 : i32
    %c0_i32_0 = arith.constant 0 : i32
    return %arg0, %c0_i32 : i32, i32
  }
}

module attributes {stable_mosaic.version = 11 : i64} {
  func.func @_conv3_crelu_expand_kernel(%arg0: i32, %arg1: memref<128x256xbf16, #tpu.memory_space<vmem>>, %arg2: memref<256x128xbf16, #tpu.memory_space<vmem>>, %arg3: memref<1x128xf32, #tpu.memory_space<vmem>>, %arg4: memref<1x128xf32, #tpu.memory_space<vmem>>, %arg5: memref<1x128xf32, #tpu.memory_space<vmem>>, %arg6: memref<1x128xf32, #tpu.memory_space<vmem>>, %arg7: memref<128x128xbf16, #tpu.memory_space<vmem>>, %arg8: memref<128x128xbf16, #tpu.memory_space<vmem>>, %arg9: memref<1x128xf32, #tpu.memory_space<vmem>>, %arg10: memref<128x128xf32, #tpu.memory_space<vmem>>, %arg11: memref<128x128xf32, #tpu.memory_space<vmem>>) attributes {dimension_semantics = [#tpu.dimension_semantics<parallel>], iteration_bounds = array<i64: 4>, scalar_prefetch = 0 : i64, scratch_operands = 0 : i64, tpu.core_type = #tpu.core_type<tc>, window_params = [{transform_indices = @transform_0, window_bounds = array<i64: 128, 256>}, {pipeline_mode = #tpu.pipeline_mode<synchronous>, transform_indices = @transform_1, window_bounds = array<i64: 256, 128>}, {pipeline_mode = #tpu.pipeline_mode<synchronous>, transform_indices = @transform_2, window_bounds = array<i64: 1, 128>}, {pipeline_mode = #tpu.pipeline_mode<synchronous>, transform_indices = @transform_3, window_bounds = array<i64: 1, 128>}, {pipeline_mode = #tpu.pipeline_mode<synchronous>, transform_indices = @transform_4, window_bounds = array<i64: 1, 128>}, {pipeline_mode = #tpu.pipeline_mode<synchronous>, transform_indices = @transform_5, window_bounds = array<i64: 1, 128>}, {pipeline_mode = #tpu.pipeline_mode<synchronous>, transform_indices = @transform_6, window_bounds = array<i64: 128, 128>}, {pipeline_mode = #tpu.pipeline_mode<synchronous>, transform_indices = @transform_7, window_bounds = array<i64: 128, 128>}, {pipeline_mode = #tpu.pipeline_mode<synchronous>, transform_indices = @transform_8, window_bounds = array<i64: 1, 128>}, {transform_indices = @transform_9, window_bounds = array<i64: 128, 128>}, {transform_indices = @transform_10, window_bounds = array<i64: 128, 128>}]} {
    %c0 = arith.constant 0 : index
    %c0_0 = arith.constant 0 : index
    %0 = vector.load %arg1[%c0, %c0_0] : memref<128x256xbf16, #tpu.memory_space<vmem>>, vector<128x256xbf16>
    %c0_1 = arith.constant 0 : index
    %c0_2 = arith.constant 0 : index
    %1 = vector.load %arg2[%c0_1, %c0_2] : memref<256x128xbf16, #tpu.memory_space<vmem>>, vector<256x128xbf16>
    %cst = arith.constant dense<0.000000e+00> : vector<128x128xf32>
    %2 = tpu.matmul %0, %1, %cst {dimension_numbers = #tpu.dot_dimension_numbers<[1], [0], [0], [1], [0, 0, 1, 1], [], []>} : vector<128x256xbf16>, vector<256x128xbf16>, vector<128x128xf32> -> vector<128x128xf32>
    %cst_3 = arith.constant 0.000000e+00 : f32
    %3 = vector.broadcast %cst_3 : f32 to vector<128x128xf32>
    %4 = arith.subf %3, %2 : vector<128x128xf32>
    %c0_4 = arith.constant 0 : index
    %c0_5 = arith.constant 0 : index
    %5 = vector.load %arg3[%c0_4, %c0_5] : memref<1x128xf32, #tpu.memory_space<vmem>>, vector<1x128xf32>
    %6 = vector.broadcast %5 : vector<1x128xf32> to vector<128x128xf32>
    %7 = arith.mulf %4, %6 : vector<128x128xf32>
    %c0_6 = arith.constant 0 : index
    %c0_7 = arith.constant 0 : index
    %8 = vector.load %arg4[%c0_6, %c0_7] : memref<1x128xf32, #tpu.memory_space<vmem>>, vector<1x128xf32>
    %9 = vector.broadcast %8 : vector<1x128xf32> to vector<128x128xf32>
    %10 = arith.addf %7, %9 : vector<128x128xf32>
    %cst_8 = arith.constant 0.000000e+00 : f32
    %11 = vector.broadcast %cst_8 : f32 to vector<128x128xf32>
    %12 = arith.maximumf %10, %11 : vector<128x128xf32>
    %c0_9 = arith.constant 0 : index
    %c0_10 = arith.constant 0 : index
    %13 = vector.load %arg5[%c0_9, %c0_10] : memref<1x128xf32, #tpu.memory_space<vmem>>, vector<1x128xf32>
    %14 = vector.broadcast %13 : vector<1x128xf32> to vector<128x128xf32>
    %15 = arith.mulf %2, %14 : vector<128x128xf32>
    %c0_11 = arith.constant 0 : index
    %c0_12 = arith.constant 0 : index
    %16 = vector.load %arg6[%c0_11, %c0_12] : memref<1x128xf32, #tpu.memory_space<vmem>>, vector<1x128xf32>
    %17 = vector.broadcast %16 : vector<1x128xf32> to vector<128x128xf32>
    %18 = arith.addf %15, %17 : vector<128x128xf32>
    %cst_13 = arith.constant 0.000000e+00 : f32
    %19 = vector.broadcast %cst_13 : f32 to vector<128x128xf32>
    %20 = arith.maximumf %18, %19 : vector<128x128xf32>
    %21 = arith.truncf %12 : vector<128x128xf32> to vector<128x128xbf16>
    %c0_14 = arith.constant 0 : index
    %c0_15 = arith.constant 0 : index
    %22 = vector.load %arg7[%c0_14, %c0_15] : memref<128x128xbf16, #tpu.memory_space<vmem>>, vector<128x128xbf16>
    %cst_16 = arith.constant dense<0.000000e+00> : vector<128x128xf32>
    %23 = tpu.matmul %21, %22, %cst_16 {dimension_numbers = #tpu.dot_dimension_numbers<[1], [0], [0], [1], [0, 0, 1, 1], [], []>} : vector<128x128xbf16>, vector<128x128xbf16>, vector<128x128xf32> -> vector<128x128xf32>
    %24 = arith.truncf %20 : vector<128x128xf32> to vector<128x128xbf16>
    %c0_17 = arith.constant 0 : index
    %c0_18 = arith.constant 0 : index
    %25 = vector.load %arg8[%c0_17, %c0_18] : memref<128x128xbf16, #tpu.memory_space<vmem>>, vector<128x128xbf16>
    %cst_19 = arith.constant dense<0.000000e+00> : vector<128x128xf32>
    %26 = tpu.matmul %24, %25, %cst_19 {dimension_numbers = #tpu.dot_dimension_numbers<[1], [0], [0], [1], [0, 0, 1, 1], [], []>} : vector<128x128xbf16>, vector<128x128xbf16>, vector<128x128xf32> -> vector<128x128xf32>
    %27 = arith.addf %23, %26 : vector<128x128xf32>
    %c0_20 = arith.constant 0 : index
    %c0_21 = arith.constant 0 : index
    %28 = vector.load %arg9[%c0_20, %c0_21] : memref<1x128xf32, #tpu.memory_space<vmem>>, vector<1x128xf32>
    %29 = vector.broadcast %28 : vector<1x128xf32> to vector<128x128xf32>
    %30 = arith.addf %27, %29 : vector<128x128xf32>
    %cst_22 = arith.constant 0.000000e+00 : f32
    %31 = vector.broadcast %cst_22 : f32 to vector<128x128xf32>
    %32 = arith.maximumf %30, %31 : vector<128x128xf32>
    %c0_23 = arith.constant 0 : index
    %c0_24 = arith.constant 0 : index
    %33 = vector.load %arg10[%c0_23, %c0_24] : memref<128x128xf32, #tpu.memory_space<vmem>>, vector<128x128xf32>
    %34 = arith.addf %32, %33 : vector<128x128xf32>
    %c0_25 = arith.constant 0 : index
    %c0_26 = arith.constant 0 : index
    %35 = vector.load %arg11[%c0_25, %c0_26] : memref<128x128xf32, #tpu.memory_space<vmem>>, vector<128x128xf32>
    tpu.vector_store %arg11[%c0_25, %c0_26], %34 {strides = array<i32>} : memref<128x128xf32, #tpu.memory_space<vmem>>, vector<128x128xf32>,
    return
  }
  func.func @transform_0(%arg0: i32) -> (i32, i32) {
    %c0_i32 = arith.constant 0 : i32
    %c0_i32_0 = arith.constant 0 : i32
    return %arg0, %c0_i32 : i32, i32
  }
  func.func @transform_1(%arg0: i32) -> (i32, i32) {
    %c0_i32 = arith.constant 0 : i32
    %c0_i32_0 = arith.constant 0 : i32
    %c0_i32_1 = arith.constant 0 : i32
    return %c0_i32, %c0_i32_0 : i32, i32
  }
  func.func @transform_2(%arg0: i32) -> (i32, i32) {
    %c0_i32 = arith.constant 0 : i32
    %c0_i32_0 = arith.constant 0 : i32
    %c0_i32_1 = arith.constant 0 : i32
    return %c0_i32, %c0_i32_0 : i32, i32
  }
  func.func @transform_3(%arg0: i32) -> (i32, i32) {
    %c0_i32 = arith.constant 0 : i32
    %c0_i32_0 = arith.constant 0 : i32
    %c0_i32_1 = arith.constant 0 : i32
    return %c0_i32, %c0_i32_0 : i32, i32
  }
  func.func @transform_4(%arg0: i32) -> (i32, i32) {
    %c0_i32 = arith.constant 0 : i32
    %c0_i32_0 = arith.constant 0 : i32
    %c0_i32_1 = arith.constant 0 : i32
    return %c0_i32, %c0_i32_0 : i32, i32
  }
  func.func @transform_5(%arg0: i32) -> (i32, i32) {
    %c0_i32 = arith.constant 0 : i32
    %c0_i32_0 = arith.constant 0 : i32
    %c0_i32_1 = arith.constant 0 : i32
    return %c0_i32, %c0_i32_0 : i32, i32
  }
  func.func @transform_6(%arg0: i32) -> (i32, i32) {
    %c0_i32 = arith.constant 0 : i32
    %c0_i32_0 = arith.constant 0 : i32
    %c0_i32_1 = arith.constant 0 : i32
    return %c0_i32, %c0_i32_0 : i32, i32
  }
  func.func @transform_7(%arg0: i32) -> (i32, i32) {
    %c0_i32 = arith.constant 0 : i32
    %c0_i32_0 = arith.constant 0 : i32
    %c0_i32_1 = arith.constant 0 : i32
    return %c0_i32, %c0_i32_0 : i32, i32
  }
  func.func @transform_8(%arg0: i32) -> (i32, i32) {
    %c0_i32 = arith.constant 0 : i32
    %c0_i32_0 = arith.constant 0 : i32
    %c0_i32_1 = arith.constant 0 : i32
    return %c0_i32, %c0_i32_0 : i32, i32
  }
  func.func @transform_9(%arg0: i32) -> (i32, i32) {
    %c0_i32 = arith.constant 0 : i32
    %c0_i32_0 = arith.constant 0 : i32
    return %arg0, %c0_i32 : i32, i32
  }
  func.func @transform_10(%arg0: i32) -> (i32, i32) {
    %c0_i32 = arith.constant 0 : i32
    %c0_i32_0 = arith.constant 0 : i32
    return %arg0, %c0_i32 : i32, i32
  }
}

</mosaic_0001>

<bundles_post_ra>
// kernel: _forward.2
= control target key start
LH: loop header
LB: loop body
LE: loop exit
PB: predicated region body
PF: predicated region fallthrough
CT: control target
= control target key end

     0   :  { %s1010_s21 = smov 0   ;;  %s1174_s0 = inlined_call_operand.vmem [shape: bf16[512,128], index: 0, kind: input, shape index: {}]   ;;  %s1175_s1 = inlined_call_operand.vmem [shape: bf16[128,128], index: 1, kind: input, shape index: {}]   ;;  %s1176_s2 = inlined_call_operand.vmem [shape: f32[1,128], index: 2, kind: input, shape index: {}]   ;;  %s1177_s3 = inlined_call_operand.vmem [shape: bf16[128,128], index: 3, kind: input, shape index: {}]   ;;  %s1178_s4 = inlined_call_operand.vmem [shape: f32[1,128], index: 4, kind: input, shape index: {}]   ;;  %s1179_s5 = inlined_call_operand.vmem [shape: bf16[512,128], index: 5, kind: output, shape index: {0}]   ;;  %s1180_s6 = inlined_call_operand.vmem [shape: f32[512,128], index: 6, kind: output, shape index: {1}]  }
   0x1 LB: > { %s761_s22 = sadd.s32 4294967295, %s973_s21   ;;  %p765_p0 = scmp.ge.s32.totalorder %s973_s21, 1  ;;  %s973_s21 = sphi %s1010_s21, %s17_s21  }
   0x2   : > { %p216_p1 = scmp.lt.s32.totalorder %s973_s21, 5 }
   0x4   : > { %p217_p2 = pnand %p765_p0, %p216_p1 }
   0x5   : > { %s766_s27 = sshll.u32 (!%p217_p2), %s761_s22, 4 }
   0x6   : > { %220 = sbr.rel (%p217_p2) target bundleno = 238 (0xee), region = 40  ;;  %p252_p3 = scmp.lt.s32.totalorder (!%p217_p2), %s766_s27, 63 }
   0xb   : > { %v885_v0 = vld [vmem:[%s1175_s1 + $0x38] sm:$0xff]  ;;  %v884_v2 = vld [vmem:[%s1175_s1 + $0x30] sm:$0xff]  ;;  %v883_v4 = vld [vmem:[%s1175_s1 + $0x28] sm:$0xff]  ;;  %s1182_s27 = smov (!%p252_p3, %s766_s27), 63 }
   0xc   : > { %v893_v1 = vld [vmem:[%s1177_s3 + $0x38] sm:$0xff]  ;;  %393 = vmatpush.bf16.msra.mxu0 %v885_v0  ;;  %941 = vmatpush.bf16.msra.mxu2 %v885_v0  ;;  %v892_v3 = vld [vmem:[%s1177_s3 + $0x30] sm:$0xff]  ;;  %v891_v5 = vld [vmem:[%s1177_s3 + $0x28] sm:$0xff]  ;;  %s767_s16 = sshll.u32 %s1182_s27, 2  ;;  %s771_s14 = sshll.u32 %s1182_s27, 3 }
   0xd   : > { %949 = vmatpush.bf16.msra.mxu3 %v893_v1  ;;  %606 = vmatpush.bf16.msra.mxu1 %v893_v1  ;;  %v882_v6 = vld [vmem:[%s1175_s1 + $0x20] sm:$0xff]  ;;  %v881_v8 = vld [vmem:[%s1175_s1 + $0x18] sm:$0xff]  ;;  %s1056_s24 = scalar_lea.vmem %s1174_s0, %s767_s16  ;;  %v880_v10 = vld [vmem:[%s1175_s1 + $0x10] sm:$0xff]  ;;  %s1101_s20 = scalar_lea.vmem %s1180_s6, %s771_s14 }
   0xe   : > { %v890_v7 = vld [vmem:[%s1177_s3 + $0x20] sm:$0xff]  ;;  %v889_v9 = vld [vmem:[%s1177_s3 + $0x18] sm:$0xff]  ;;  %v888_v13 = vld [vmem:[%s1177_s3 + $0x10] sm:$0xff]  ;;  %s1120_s26 = scalar_lea.vmem %s1179_s5, %s767_s16 }
   0xf   : > { %v269_v11 = vld [vmem:[%s1056_s24] sm:$0xff]   ;;  %v879_v18 = vld [vmem:[%s1175_s1 + $0x8] sm:$0xff]  ;;  %v273_v44 = vld [vmem:[%s1056_s24 + $0x10] sm:$0xff]  }
  0x10   : > { %394 = vmatpush.bf16.msra.mxu0 %v884_v2  ;;  %942 = vmatpush.bf16.msra.mxu2 %v884_v2  ;;  %v277_v12 = vld [vmem:[%s1056_s24 + $0x20] sm:$0xff]   ;;  %v285_v14 = vunpack.c.l.bf16 %v269_v11  ;;  %v286_v15 = vunpack.c.h.bf16 %v269_v11  ;;  %v887_v19 = vld [vmem:[%s1177_s3 + $0x8] sm:$0xff]  ;;  %v281_v45 = vld [vmem:[%s1056_s24 + $0x30] sm:$0xff]   ;;  %v289_v46 = vunpack.c.l.bf16 %v273_v44  ;;  %v290_v47 = vunpack.c.h.bf16 %v273_v44 }
  0x11   : > { %950 = vmatpush.bf16.msra.mxu3 %v892_v3  ;;  %607 = vmatpush.bf16.msra.mxu1 %v892_v3  ;;  %v293_v16 = vunpack.c.l.bf16 %v277_v12  ;;  %v294_v17 = vunpack.c.h.bf16 %v277_v12  ;;  %v878_v24 = vld [vmem:[%s1175_s1] sm:$0xff]  ;;  %v271_v30 = vld [vmem:[%s1056_s24 + $0x8] sm:$0xff]   ;;  %v297_v48 = vunpack.c.l.bf16 %v281_v45  ;;  %v298_v49 = vunpack.c.h.bf16 %v281_v45  ;;  %v876_v56 = vld [vmem:[%s1056_s24 + $0x30] sm:$0xff] }
  0x12   : > { %v301_v20 = vmax.f32 %v285_v14, 0.0  ;;  %v302_v21 = vmax.f32 %v286_v15, 0.0  ;;  %v886_v25 = vld [vmem:[%s1177_s3] sm:$0xff]  ;;  %v279_v31 = vld [vmem:[%s1056_s24 + $0x28] sm:$0xff]   ;;  %v287_v32 = vunpack.c.l.bf16 %v271_v30  ;;  %v288_v33 = vunpack.c.h.bf16 %v271_v30  ;;  %v872_v57 = vld [vmem:[%s1056_s24 + $0x10] sm:$0xff] }
  0x13   : > { %v309_v22 = vmax.f32 %v293_v16, 0.0  ;;  %v310_v23 = vmax.f32 %v294_v17, 0.0  ;;  %v874_v28 = vld [vmem:[%s1056_s24 + $0x20] sm:$0xff]  ;;  %v295_v34 = vunpack.c.l.bf16 %v279_v31  ;;  %v296_v35 = vunpack.c.h.bf16 %v279_v31  ;;  %v875_v42 = vld [vmem:[%s1056_s24 + $0x28] sm:$0xff]  ;;  %v275_v58 = vld [vmem:[%s1056_s24 + $0x18] sm:$0xff]  }
  0x14   : > { %395 = vmatpush.bf16.msra.mxu0 %v883_v4  ;;  %943 = vmatpush.bf16.msra.mxu2 %v883_v4  ;;  %v317_v26 = vpack.c.bf16 %v302_v21, %v301_v20  ;;  %v870_v29 = vld [vmem:[%s1056_s24] sm:$0xff]  ;;  %v303_v36 = vmax.f32 %v287_v32, 0.0  ;;  %v304_v37 = vmax.f32 %v288_v33, 0.0  ;;  %v871_v43 = vld [vmem:[%s1056_s24 + $0x8] sm:$0xff]  ;;  %v305_v50 = vmax.f32 %v289_v46, 0.0  ;;  %v283_v59 = vld [vmem:[%s1056_s24 + $0x38] sm:$0xff]  }
  0x15   : > { %951 = vmatpush.bf16.msra.mxu3 %v891_v5  ;;  %608 = vmatpush.bf16.msra.mxu1 %v891_v5  ;;  %v321_v27 = vpack.c.bf16 %v310_v23, %v309_v22  ;;  %v311_v38 = vmax.f32 %v295_v34, 0.0  ;;  %v312_v39 = vmax.f32 %v296_v35, 0.0  ;;  %v306_v51 = vmax.f32 %v290_v47, 0.0  ;;  %v1107_v12 = vld [vmem:[%s1176_s2] ss:$0 sm:$0xff] }
  0x16   : > { %v318_v40 = vpack.c.bf16 %v304_v37, %v303_v36  ;;  %v313_v52 = vmax.f32 %v297_v48, 0.0  ;;  %v314_v53 = vmax.f32 %v298_v49, 0.0  ;;  %v291_v60 = vunpack.c.l.bf16 %v275_v58 }
  0x17   : > { %v322_v41 = vpack.c.bf16 %v312_v39, %v311_v38  ;;  %v319_v54 = vpack.c.bf16 %v306_v51, %v305_v50  ;;  %v292_v61 = vunpack.c.h.bf16 %v275_v58  ;;  %v299_v62 = vunpack.c.l.bf16 %v283_v59 }
  0x18   : > { %396 = vmatpush.bf16.msra.mxu0 %v882_v6  ;;  %944 = vmatpush.bf16.msra.mxu2 %v882_v6  ;;  %v323_v55 = vpack.c.bf16 %v314_v53, %v313_v52  ;;  %v300_v63 = vunpack.c.h.bf16 %v283_v59  ;;  %v307_v0 = vmax.f32 %v291_v60, 0.0  ;;  %v877_v6 = vld [vmem:[%s1056_s24 + $0x38] sm:$0xff] }
  0x19   : > { %952 = vmatpush.bf16.msra.mxu3 %v890_v7  ;;  %609 = vmatpush.bf16.msra.mxu1 %v890_v7  ;;  %v308_v1 = vmax.f32 %v292_v61, 0.0  ;;  %v315_v2 = vmax.f32 %v299_v62, 0.0  ;;  %v873_v7 = vld [vmem:[%s1056_s24 + $0x18] sm:$0xff] }
  0x1a   : > { %v316_v3 = vmax.f32 %v300_v63, 0.0 }
  0x1b   : > { %v320_v4 = vpack.c.bf16 %v308_v1, %v307_v0 }
  0x1c   : > { %397 = vmatpush.bf16.msra.mxu0 %v881_v8  ;;  %945 = vmatpush.bf16.msra.mxu2 %v881_v8  ;;  %v324_v5 = vpack.c.bf16 %v316_v3, %v315_v2  ;;  %v1096_v8 = vld [vmem:[%s1178_s4] ss:$0 sm:$0xff] }
  0x1d   : > { %953 = vmatpush.bf16.msra.mxu3 %v889_v9  ;;  %610 = vmatpush.bf16.msra.mxu1 %v889_v9 }
  0x20   : > { %398 = vmatpush.bf16.msra.mxu0 %v880_v10  ;;  %946 = vmatpush.bf16.msra.mxu2 %v880_v10 }
  0x21   : > { %954 = vmatpush.bf16.msra.mxu3 %v888_v13  ;;  %611 = vmatpush.bf16.msra.mxu1 %v888_v13 }
  0x24   : > { %399 = vmatpush.bf16.msra.mxu0 %v879_v18  ;;  %947 = vmatpush.bf16.msra.mxu2 %v879_v18 }
  0x25   : > { %955 = vmatpush.bf16.msra.mxu3 %v887_v19  ;;  %612 = vmatpush.bf16.msra.mxu1 %v887_v19 }
  0x28   : > { %400 = vmatpush.bf16.msra.mxu0 %v878_v24  ;;  %948 = vmatpush.bf16.msra.mxu2 %v878_v24 }
  0x29   : > { %956 = vmatpush.bf16.msra.mxu3 %v886_v25  ;;  %613 = vmatpush.bf16.msra.mxu1 %v886_v25 }
  0x2b   : > { %401 = vmatmul.bf16.vlgmr.msra.gmra.mxu0 %v317_v26  ;;  %421 = vmatmul.bf16.vlgmr.msra.gmra.mxu2 %v321_v27 }
  0x2c   : > { %634 = vmatmul.bf16.vlgmr.msra.gmra.mxu3 %v874_v28  ;;  %614 = vmatmul.bf16.vlgmr.msra.gmra.mxu1 %v870_v29 }
  0x3b   : > { %406 = vmatmul.bf16.gmra.mxu0 %v318_v40  ;;  %426 = vmatmul.bf16.gmra.mxu2 %v322_v41 }
  0x3c   : > { %639 = vmatmul.bf16.gmra.mxu3 %v875_v42  ;;  %619 = vmatmul.bf16.gmra.mxu1 %v871_v43 }
  0x4b   : > { %411 = vmatmul.bf16.gmra.mxu0 %v319_v54  ;;  %431 = vmatmul.bf16.gmra.mxu2 %v323_v55 }
  0x4c   : > { %644 = vmatmul.bf16.gmra.mxu3 %v876_v56  ;;  %624 = vmatmul.bf16.gmra.mxu1 %v872_v57 }
  0x5b   : > { %416 = vmatmul.bf16.gmra.mxu0 %v320_v4  ;;  %436 = vmatmul.bf16.gmra.mxu2 %v324_v5 }
  0x5c   : > { %649 = vmatmul.bf16.gmra.mxu3 %v877_v6  ;;  %629 = vmatmul.bf16.gmra.mxu1 %v873_v7 }
  0xa8   : > { %v402_v9 = vpop.f32.mrf.mxu0 }
  0xa9   : > { %v615_v10 = vpop.f32.mrf.mxu1  ;;  %v403_v14 = vadd.f32 %v1107_v12, %v402_v9 }
  0xaa   : > { %v616_v11 = vadd.f32 %v1096_v8, %v615_v10 }
  0xab   : > { %v442_v21 = vmax.f32 %v403_v14, 0.0 }
  0xac   : > { %655 = vst [vmem:[%s1101_s20] sm:$0xff] %v616_v11 }
  0xae   : > { %v422_v13 = vpop.f32.mrf.mxu2 }
  0xaf   : > { %v635_v15 = vpop.f32.mrf.mxu3  ;;  %v423_v23 = vadd.f32 %v1107_v12, %v422_v13 }
  0xb0   : > { %v636_v16 = vadd.f32 %v1096_v8, %v635_v15  ;;  %v404_v17 = vpop.f32.mrf.mxu0 }
  0xb1   : > { %v405_v18 = vadd.f32 %v1107_v12, %v404_v17  ;;  %v617_v19 = vpop.f32.mrf.mxu1  ;;  %v450_v30 = vmax.f32 %v423_v23, 0.0 }
  0xb2   : > { %663 = vst [vmem:[%s1101_s20 + $0x40] sm:$0xff] %v636_v16  ;;  %v618_v20 = vadd.f32 %v1096_v8, %v617_v19 }
  0xb3   : > { %v443_v22 = vmax.f32 %v405_v18, 0.0 }
  0xb4   : > { %656 = vst [vmem:[%s1101_s20 + $0x8] sm:$0xff] %v618_v20 }
  0xb5   : > { %v897_v24 = vpack.c.bf16 %v443_v22, %v442_v21 }
  0xb6   : > { %v424_v25 = vpop.f32.mrf.mxu2 }
  0xb7   : > { %898 = vst [vmem:[%s1120_s26] sm:$0xff] %v897_v24   ;;  %v425_v26 = vadd.f32 %v1107_v12, %v424_v25  ;;  %v637_v27 = vpop.f32.mrf.mxu3 }
  0xb8   : > { %v638_v28 = vadd.f32 %v1096_v8, %v637_v27  ;;  %v407_v29 = vpop.f32.mrf.mxu0 }
  0xb9   : > { %v451_v31 = vmax.f32 %v425_v26, 0.0  ;;  %v620_v32 = vpop.f32.mrf.mxu1  ;;  %v408_v36 = vadd.f32 %v1107_v12, %v407_v29 }
  0xba   : > { %664 = vst [vmem:[%s1101_s20 + $0x48] sm:$0xff] %v638_v28  ;;  %v621_v33 = vadd.f32 %v1096_v8, %v620_v32 }
  0xbb   : > { %v917_v34 = vpack.c.bf16 %v451_v31, %v450_v30  ;;  %v444_v43 = vmax.f32 %v408_v36, 0.0 }
  0xbc   : > { %657 = vst [vmem:[%s1101_s20 + $0x10] sm:$0xff] %v621_v33 }
  0xbd   : > { %937 = vst [vmem:[%s1120_s26 + $0x20] sm:$0xff] %v917_v34  }
  0xbe   : > { %v427_v35 = vpop.f32.mrf.mxu2 }
  0xbf   : > { %v640_v37 = vpop.f32.mrf.mxu3  ;;  %v428_v45 = vadd.f32 %v1107_v12, %v427_v35 }
  0xc0   : > { %v641_v38 = vadd.f32 %v1096_v8, %v640_v37  ;;  %v409_v39 = vpop.f32.mrf.mxu0 }
  0xc1   : > { %v410_v40 = vadd.f32 %v1107_v12, %v409_v39  ;;  %v622_v41 = vpop.f32.mrf.mxu1  ;;  %v452_v52 = vmax.f32 %v428_v45, 0.0 }
  0xc2   : > { %665 = vst [vmem:[%s1101_s20 + $0x50] sm:$0xff] %v641_v38  ;;  %v623_v42 = vadd.f32 %v1096_v8, %v622_v41 }
  0xc3   : > { %v445_v44 = vmax.f32 %v410_v40, 0.0 }
  0xc4   : > { %658 = vst [vmem:[%s1101_s20 + $0x18] sm:$0xff] %v623_v42 }
  0xc5   : > { %v902_v46 = vpack.c.bf16 %v445_v44, %v444_v43 }
  0xc6   : > { %v429_v47 = vpop.f32.mrf.mxu2 }
  0xc7   : > { %934 = vst [vmem:[%s1120_s26 + $0x8] sm:$0xff] %v902_v46   ;;  %v430_v48 = vadd.f32 %v1107_v12, %v429_v47  ;;  %v642_v49 = vpop.f32.mrf.mxu3 }
  0xc8   : > { %v643_v50 = vadd.f32 %v1096_v8, %v642_v49  ;;  %v412_v51 = vpop.f32.mrf.mxu0 }
  0xc9   : > { %v453_v53 = vmax.f32 %v430_v48, 0.0  ;;  %v625_v54 = vpop.f32.mrf.mxu1  ;;  %v413_v58 = vadd.f32 %v1107_v12, %v412_v51 }
  0xca   : > { %666 = vst [vmem:[%s1101_s20 + $0x58] sm:$0xff] %v643_v50  ;;  %v626_v55 = vadd.f32 %v1096_v8, %v625_v54 }
  0xcb   : > { %v922_v56 = vpack.c.bf16 %v453_v53, %v452_v52  ;;  %v446_v1 = vmax.f32 %v413_v58, 0.0 }
  0xcc   : > { %659 = vst [vmem:[%s1101_s20 + $0x20] sm:$0xff] %v626_v55 }
  0xcd   : > { %938 = vst [vmem:[%s1120_s26 + $0x28] sm:$0xff] %v922_v56  }
  0xce   : > { %v432_v57 = vpop.f32.mrf.mxu2 }
  0xcf   : > { %v645_v59 = vpop.f32.mrf.mxu3  ;;  %v433_v3 = vadd.f32 %v1107_v12, %v432_v57 }
  0xd0   : > { %v646_v60 = vadd.f32 %v1096_v8, %v645_v59  ;;  %v414_v61 = vpop.f32.mrf.mxu0 }
  0xd1   : > { %v415_v62 = vadd.f32 %v1107_v12, %v414_v61  ;;  %v627_v63 = vpop.f32.mrf.mxu1  ;;  %v454_v11 = vmax.f32 %v433_v3, 0.0 }
  0xd2   : > { %667 = vst [vmem:[%s1101_s20 + $0x60] sm:$0xff] %v646_v60  ;;  %v628_v0 = vadd.f32 %v1096_v8, %v627_v63 }
  0xd3   : > { %v447_v2 = vmax.f32 %v415_v62, 0.0 }
  0xd4   : > { %660 = vst [vmem:[%s1101_s20 + $0x28] sm:$0xff] %v628_v0 }
  0xd5   : > { %v907_v4 = vpack.c.bf16 %v447_v2, %v446_v1 }
  0xd6   : > { %v434_v5 = vpop.f32.mrf.mxu2 }
  0xd7   : > { %935 = vst [vmem:[%s1120_s26 + $0x10] sm:$0xff] %v907_v4   ;;  %v435_v6 = vadd.f32 %v1107_v12, %v434_v5  ;;  %v647_v7 = vpop.f32.mrf.mxu3 }
  0xd8   : > { %v648_v9 = vadd.f32 %v1096_v8, %v647_v7  ;;  %v417_v10 = vpop.f32.mrf.mxu0 }
  0xd9   : > { %v455_v13 = vmax.f32 %v435_v6, 0.0  ;;  %v630_v14 = vpop.f32.mrf.mxu1  ;;  %v418_v18 = vadd.f32 %v1107_v12, %v417_v10 }
  0xda   : > { %668 = vst [vmem:[%s1101_s20 + $0x68] sm:$0xff] %v648_v9  ;;  %v631_v15 = vadd.f32 %v1096_v8, %v630_v14 }
  0xdb   : > { %v927_v16 = vpack.c.bf16 %v455_v13, %v454_v11  ;;  %v448_v25 = vmax.f32 %v418_v18, 0.0 }
  0xdc   : > { %661 = vst [vmem:[%s1101_s20 + $0x30] sm:$0xff] %v631_v15 }
  0xdd   : > { %939 = vst [vmem:[%s1120_s26 + $0x30] sm:$0xff] %v927_v16  }
  0xde   : > { %v437_v17 = vpop.f32.mrf.mxu2 }
  0xdf   : > { %v650_v19 = vpop.f32.mrf.mxu3  ;;  %v438_v27 = vadd.f32 %v1107_v12, %v437_v17 }
  0xe0   : > { %v651_v20 = vadd.f32 %v1096_v8, %v650_v19  ;;  %v419_v21 = vpop.f32.mrf.mxu0 }
  0xe1   : > { %v420_v22 = vadd.f32 %v1107_v12, %v419_v21  ;;  %v632_v23 = vpop.f32.mrf.mxu1  ;;  %v456_v33 = vmax.f32 %v438_v27, 0.0 }
  0xe2   : > { %669 = vst [vmem:[%s1101_s20 + $0x70] sm:$0xff] %v651_v20  ;;  %v633_v24 = vadd.f32 %v1096_v8, %v632_v23 }
  0xe3   : > { %v449_v26 = vmax.f32 %v420_v22, 0.0 }
  0xe4   : > { %662 = vst [vmem:[%s1101_s20 + $0x38] sm:$0xff] %v633_v24 }
  0xe5   : > { %v912_v28 = vpack.c.bf16 %v449_v26, %v448_v25 }
  0xe6   : > { %v439_v29 = vpop.f32.mrf.mxu2 }
  0xe7   : > { %936 = vst [vmem:[%s1120_s26 + $0x18] sm:$0xff] %v912_v28   ;;  %v440_v30 = vadd.f32 %v1107_v12, %v439_v29  ;;  %v652_v31 = vpop.f32.mrf.mxu3 }
  0xe8   : > { %v653_v32 = vadd.f32 %v1096_v8, %v652_v31 }
  0xe9   : > { %v457_v34 = vmax.f32 %v440_v30, 0.0 }
  0xea   : > { %670 = vst [vmem:[%s1101_s20 + $0x78] sm:$0xff] %v653_v32 }
  0xeb   : > { %v932_v35 = vpack.c.bf16 %v457_v34, %v456_v33 }
  0xed   : > { %940 = vst [vmem:[%s1120_s26 + $0x38] sm:$0xff] %v932_v35  }
  0xee PF: > { %s17_s21 = sadd.s32 1, %s973_s21  }
  0xef   : > { %p14_p4 = scmp.ge.s32.totalorder %s17_s21, 6  }
  0xf1   :  { %16 = sbr.rel (!%p14_p4) target bundleno = 1 (0x1), region = 82 }

// kernel: _forward.3
= control target key start
LH: loop header
LB: loop body
LE: loop exit
PB: predicated region body
PF: predicated region fallthrough
CT: control target
= control target key end

     0   :  { %15 = vsyncpa [#allocation3], 0  ;;  %s2046_s0 = inlined_call_operand.vmem [shape: bf16[512,256], index: 0, kind: input, shape index: {}]   ;;  %s2047_s1 = inlined_call_operand.vmem [shape: bf16[256,128], index: 1, kind: input, shape index: {}]   ;;  %s2048_s2 = inlined_call_operand.vmem [shape: f32[1,128], index: 2, kind: input, shape index: {}]   ;;  %s2049_s3 = inlined_call_operand.vmem [shape: f32[1,128], index: 3, kind: input, shape index: {}]   ;;  %s2050_s4 = inlined_call_operand.vmem [shape: f32[1,128], index: 4, kind: input, shape index: {}]   ;;  %s2051_s5 = inlined_call_operand.vmem [shape: f32[1,128], index: 5, kind: input, shape index: {}]   ;;  %s2052_s6 = inlined_call_operand.vmem [shape: bf16[128,128], index: 6, kind: input, shape index: {}]   ;;  %s2053_s7 = inlined_call_operand.vmem [shape: bf16[128,128], index: 7, kind: input, shape index: {}]   ;;  %s2054_s8 = inlined_call_operand.vmem [shape: f32[1,128], index: 8, kind: input, shape index: {}]   ;;  %s2055_s9 = inlined_call_operand.vmem [shape: f32[512,128], index: 9, kind: input, shape index: {}]   ;;  %s2056_s10 = inlined_call_operand.hbm [shape: f32[512,128], index: 10, kind: output, shape index: {}]  }
   0x1   :  { %17 = vsyncpa [#allocation3 + $0x1], 0  ;;  %s1676_s13 = smov 0   ;;  %s1678_s14 = smov 0  }
   0x2   :  { %s1680_s15 = smov 0   ;;  %s1682_s16 = smov 0  }
   0x3 LB: > { %s1697_s17 = sadd.s32 4294967295, %s1617_s16   ;;  %s1252_s18 = sadd.s32 4294967294, %s1617_s16   ;;  %s1617_s16 = sphi %s1682_s16, %s2066_s16   ;;  %s1613_s15 = sphi %s1680_s15, %s2065_s15   ;;  %s1609_s14 = sphi %s1678_s14, %s2064_s14   ;;  %s1605_s13 = sphi %s1676_s13, %s2063_s13  }
   0x4   : > { %s1701_s19 = sadd.s32 1, %s1617_s16   ;;  %s250_s20 = sadd.s32 1, %s1613_s15 }
   0x5   : > { %s247_s21 = ssub.s32 %s1617_s16, %s1701_s19  ;;  %p260_p0 = scmp.ne.s32.totalorder %s1613_s15, %s1609_s14 }
   0x6   : > { %p248_p1 = scmp.eq.s32.totalorder %s247_s21, 0  ;;  %p261_p2 = scmp.eq.s32.totalorder %s1697_s17, 3 }
   0x7   : > { %p266_p3 = scmp.ne.s32.totalorder %s1609_s14, %s1605_s13  ;;  %p267_p4 = scmp.eq.s32.totalorder %s1252_s18, 3 }
   0x8   : > { %s1712_s22 = scalar_select %p248_p1, %s1613_s15, %s250_s20  }
   0x9   : > { %p1714_p5 = por %p261_p2, %p260_p0  ;;  %p1718_p6 = por %p267_p4, %p266_p3 }
   0xa   : > { %2058 = sst [smem:[#allocation5_spill]] %s1712_s22  ;;  %p1255_p7 = scmp.ge.s32.totalorder %s1617_s16, 1 }
   0xb   : > { %p328_p8 = scmp.lt.s32.totalorder %s1617_s16, 5 }
   0xd   : > { %p329_p9 = pnand %p1255_p7, %p328_p8 }
   0xe   : > { %s1257_s26 = sshll.u32 (!%p329_p9), %s1697_s17, 4  ;;  %s369_s11 = sand.u32 (!%p329_p9), 1, %s1609_s14  }
   0xf   : > { %332 = sbr.rel (%p329_p9) target bundleno = 463 (0x1cf), region = 60  ;;  %p373_p10 = scmp.lt.s32.totalorder (!%p329_p9), %s1257_s26, 63 }
  0x10   : > { %s1256_s25 = sshll.u32 (!%p329_p9), %s369_s11, 7  ;;  %s1575_s27 = scalar_lea.hbm (!%p329_p9), %s2056_s10, 512 }
  0x14   : > { %v1483_v0 = vld [vmem:[%s2047_s1 + $0x38] sm:$0xff]  ;;  %v1482_v2 = vld [vmem:[%s2047_s1 + $0x30] sm:$0xff]  ;;  %v1481_v4 = vld [vmem:[%s2047_s1 + $0x28] sm:$0xff]  ;;  %s2068_s26 = smov (!%p373_p10, %s1257_s26), 63 }
  0x15   : > { %v1491_v1 = vld [vmem:[%s2047_s1 + $0x78] sm:$0xff]  ;;  %610 = vmatpush.bf16.msra.mxu0 %v1483_v0  ;;  %v1490_v3 = vld [vmem:[%s2047_s1 + $0x70] sm:$0xff]  ;;  %v1489_v5 = vld [vmem:[%s2047_s1 + $0x68] sm:$0xff]  ;;  %s2057_s29 = sshll.u32 %s2068_s26, 3 }
  0x16   : > { %659 = vmatpush.bf16.msra.mxu1 %v1491_v1  ;;  %v1480_v6 = vld [vmem:[%s2047_s1 + $0x20] sm:$0xff]  ;;  %v1479_v8 = vld [vmem:[%s2047_s1 + $0x18] sm:$0xff]  ;;  %v1478_v10 = vld [vmem:[%s2047_s1 + $0x10] sm:$0xff]  ;;  %s1775_s21 = scalar_lea.vmem %s2046_s0, %s2057_s29  ;;  %s1964_s29 = scalar_lea.vmem [#allocation2], %s1256_s25 }
  0x17   : > { %v1488_v7 = vld [vmem:[%s2047_s1 + $0x60] sm:$0xff]  ;;  %v1487_v9 = vld [vmem:[%s2047_s1 + $0x58] sm:$0xff]  ;;  %v1486_v11 = vld [vmem:[%s2047_s1 + $0x50] sm:$0xff]  ;;  %s1175_s22 = sshll.u32 %s1964_s29, 4  ;;  %s1176_s22 = int_to_ptr.vmem [resolvable:$true] %s1175_s22 }
  0x18   : > { %v1477_v12 = vld [vmem:[%s2047_s1 + $0x8] sm:$0xff]  ;;  %v1476_v14 = vld [vmem:[%s2047_s1] sm:$0xff]  ;;  %v1272_v22 = vld [vmem:[%s1775_s21 + $0x10] sm:$0xf] }
  0x19   : > { %611 = vmatpush.bf16.msra.mxu0 %v1482_v2  ;;  %v1485_v13 = vld [vmem:[%s2047_s1 + $0x48] sm:$0xff]  ;;  %v1484_v15 = vld [vmem:[%s2047_s1 + $0x40] sm:$0xff]  ;;  %v1463_v23 = vld [vmem:[%s1775_s21 + $0x14] sm:$0xf0] }
  0x1a   : > { %660 = vmatpush.bf16.msra.mxu1 %v1490_v3  ;;  %v1264_v16 = vld [vmem:[%s1775_s21] sm:$0xf]  ;;  %v1461_v17 = vld [vmem:[%s1775_s21 + $0x4] sm:$0xf0]  ;;  %v1460_v18 = vld [vmem:[%s1775_s21 + $0x4] sm:$0xf]  ;;  %v1273_v26 = vor.u32 %v1463_v23, %v1272_v22 }
  0x1b   : > { %v1266_v19 = vld [vmem:[%s1775_s21 + $0x8] sm:$0xf0]  ;;  %v1265_v20 = vor.u32 %v1461_v17, %v1264_v16  ;;  %v1462_v24 = vld [vmem:[%s1775_s21 + $0x14] sm:$0xf]  ;;  %v1274_v25 = vld [vmem:[%s1775_s21 + $0x18] sm:$0xf0] }
  0x1c   : > { %v1269_v21 = vor.u32 %v1460_v18, %v1266_v19  ;;  %v1277_v27 = vor.u32 %v1462_v24, %v1274_v25  ;;  %v1280_v28 = vld [vmem:[%s1775_s21 + $0x20] sm:$0xf]  ;;  %v1465_v29 = vld [vmem:[%s1775_s21 + $0x24] sm:$0xf0]  ;;  %v1464_v30 = vld [vmem:[%s1775_s21 + $0x24] sm:$0xf] }
  0x1d   : > { %612 = vmatpush.bf16.msra.mxu0 %v1481_v4  ;;  %v1282_v31 = vld [vmem:[%s1775_s21 + $0x28] sm:$0xf0]  ;;  %v1281_v32 = vor.u32 %v1465_v29, %v1280_v28  ;;  %v1288_v34 = vld [vmem:[%s1775_s21 + $0x30] sm:$0xf]  ;;  %v1467_v35 = vld [vmem:[%s1775_s21 + $0x34] sm:$0xf0] }
  0x1e   : > { %661 = vmatpush.bf16.msra.mxu1 %v1489_v5  ;;  %v1285_v33 = vor.u32 %v1464_v30, %v1282_v31  ;;  %v1466_v36 = vld [vmem:[%s1775_s21 + $0x34] sm:$0xf]  ;;  %v1290_v37 = vld [vmem:[%s1775_s21 + $0x38] sm:$0xf0]  ;;  %v1289_v38 = vor.u32 %v1467_v35, %v1288_v34  ;;  %v1296_v40 = vld [vmem:[%s1775_s21 + $0x40] sm:$0xf] }
  0x1f   : > { %v1293_v39 = vor.u32 %v1466_v36, %v1290_v37  ;;  %v1469_v41 = vld [vmem:[%s1775_s21 + $0x44] sm:$0xf0]  ;;  %v1468_v42 = vld [vmem:[%s1775_s21 + $0x44] sm:$0xf]  ;;  %v1298_v43 = vld [vmem:[%s1775_s21 + $0x48] sm:$0xf0] }
  0x20   : > { %v1297_v44 = vor.u32 %v1469_v41, %v1296_v40  ;;  %v1301_v45 = vor.u32 %v1468_v42, %v1298_v43  ;;  %v1304_v46 = vld [vmem:[%s1775_s21 + $0x50] sm:$0xf]  ;;  %v1471_v47 = vld [vmem:[%s1775_s21 + $0x54] sm:$0xf0]  ;;  %v1470_v48 = vld [vmem:[%s1775_s21 + $0x54] sm:$0xf] }
  0x21   : > { %613 = vmatpush.bf16.msra.mxu0 %v1480_v6  ;;  %v1306_v49 = vld [vmem:[%s1775_s21 + $0x58] sm:$0xf0]  ;;  %v1305_v50 = vor.u32 %v1471_v47, %v1304_v46  ;;  %v1506_v54 = vld [vmem:[%s2053_s7 + $0x30] sm:$0xff]  ;;  %v1505_v56 = vld [vmem:[%s2053_s7 + $0x28] sm:$0xff] }
  0x22   : > { %662 = vmatpush.bf16.msra.mxu1 %v1488_v7  ;;  %v1309_v51 = vor.u32 %v1470_v48, %v1306_v49  ;;  %v1507_v52 = vld [vmem:[%s2053_s7 + $0x38] sm:$0xff]  ;;  %v1498_v55 = vld [vmem:[%s2052_s6 + $0x30] sm:$0xff]  ;;  %v1497_v57 = vld [vmem:[%s2052_s6 + $0x28] sm:$0xff] }
  0x23   : > { %v1499_v53 = vld [vmem:[%s2052_s6 + $0x38] sm:$0xff]  ;;  %932 = vmatpush.bf16.msra.mxu2 %v1507_v52  ;;  %v1312_v58 = vld [vmem:[%s1775_s21 + $0x60] sm:$0xf]  ;;  %v1473_v59 = vld [vmem:[%s1775_s21 + $0x64] sm:$0xf0] }
  0x24   : > { %1029 = vmatpush.bf16.msra.mxu3 %v1499_v53  ;;  %v1472_v60 = vld [vmem:[%s1775_s21 + $0x64] sm:$0xf]  ;;  %v1314_v61 = vld [vmem:[%s1775_s21 + $0x68] sm:$0xf0]  ;;  %v1313_v63 = vor.u32 %v1473_v59, %v1312_v58  ;;  %v1503_v2 = vld [vmem:[%s2053_s7 + $0x18] sm:$0xff] }
  0x25   : > { %614 = vmatpush.bf16.msra.mxu0 %v1479_v8  ;;  %v1504_v62 = vld [vmem:[%s2053_s7 + $0x20] sm:$0xff]  ;;  %v1317_v0 = vor.u32 %v1472_v60, %v1314_v61  ;;  %v1495_v3 = vld [vmem:[%s2052_s6 + $0x18] sm:$0xff]  ;;  %v1502_v4 = vld [vmem:[%s2053_s7 + $0x10] sm:$0xff] }
  0x26   : > { %663 = vmatpush.bf16.msra.mxu1 %v1487_v9  ;;  %v1496_v1 = vld [vmem:[%s2052_s6 + $0x20] sm:$0xff]  ;;  %v1494_v5 = vld [vmem:[%s2052_s6 + $0x10] sm:$0xff]  ;;  %v1501_v6 = vld [vmem:[%s2053_s7 + $0x8] sm:$0xff] }
  0x27   : > { %933 = vmatpush.bf16.msra.mxu2 %v1506_v54  ;;  %v1320_v7 = vld [vmem:[%s1775_s21 + $0x70] sm:$0xf]  ;;  %v1475_v8 = vld [vmem:[%s1775_s21 + $0x74] sm:$0xf0]  ;;  %v1474_v9 = vld [vmem:[%s1775_s21 + $0x74] sm:$0xf] }
  0x28   : > { %1030 = vmatpush.bf16.msra.mxu3 %v1498_v55  ;;  %v1866_v19 = vld [vmem:[%s2050_s4] ss:$0 sm:$0xff] }
  0x29   : > { %615 = vmatpush.bf16.msra.mxu0 %v1478_v10  ;;  %v1322_v10 = vld [vmem:[%s1775_s21 + $0x78] sm:$0xf0]  ;;  %v1877_v23 = vld [vmem:[%s2051_s5] ss:$0 sm:$0xff]  ;;  %s2061_s21 = sshll.u32 %s2068_s26, 3  ;;  %s1508_s26 = sshll.u32 %s1697_s17, 7 }
  0x2a   : > { %664 = vmatpush.bf16.msra.mxu1 %v1486_v11  ;;  %v1493_v11 = vld [vmem:[%s2052_s6 + $0x8] sm:$0xff]  ;;  %v1883_v28 = vld [vmem:[%s2049_s3] ss:$0 sm:$0xff]  ;;  %s1958_s20 = scalar_lea.vmem %s2055_s9, %s2061_s21  ;;  %s1174_s30 = scalar_lea.hbm %s2056_s10, %s1508_s26 }
  0x2b   : > { %934 = vmatpush.bf16.msra.mxu2 %v1505_v56  ;;  %s1177_s21 = sshll.u32 %s1174_s30, 4  ;;  %s1163_s17 = scalar_lea.sflag [#allocation3], %s369_s11  ;;  %s1178_s21 = int_to_ptr.hbm [resolvable:$true] %s1177_s21 }
  0x2c   : > { %1031 = vmatpush.bf16.msra.mxu3 %v1497_v57  ;;  %s1569_s12 = sshra.s32 %s1178_s21, 4  ;;  %s1570_s12 = int_to_ptr.hbm [resolvable:$true] %s1569_s12 }
  0x2d   : > { %616 = vmatpush.bf16.msra.mxu0 %v1477_v12  ;;  %v1500_v12 = vld [vmem:[%s2053_s7] sm:$0xff]  ;;  %s1571_s18 = scalar_lea.hbm %s1570_s12, 128  ;;  %p1576_p0 = scmp.lt.s32.totalorder %s1570_s12, %s2056_s10 }
  0x2e   : > { %665 = vmatpush.bf16.msra.mxu1 %v1485_v13  ;;  %v1321_v13 = vor.u32 %v1475_v8, %v1320_v7  ;;  %p1572_p11 = scmp.ne.s32.totalorder %s1570_s12, %s1571_s18  ;;  %p1577_p1 = scmp.lt.s32.totalorder %s1575_s27, %s1571_s18 }
  0x2f   : > { %935 = vmatpush.bf16.msra.mxu2 %v1504_v62 }
  0x30   : > { %1032 = vmatpush.bf16.msra.mxu3 %v1496_v1  ;;  %p1573_p12 = pnand %p1572_p11, %p1714_p5  ;;  %p1578_p2 = por %p1577_p1, %p1576_p0 }
  0x31   : > { %617 = vmatpush.bf16.msra.mxu0 %v1476_v14  ;;  %v1325_v14 = vor.u32 %v1474_v9, %v1322_v10 }
  0x32   : > { %666 = vmatpush.bf16.msra.mxu1 %v1484_v15  ;;  %v1492_v15 = vld [vmem:[%s2052_s6] sm:$0xff]  ;;  %p1574_p13 = pneg %p1573_p12 }
  0x33   : > { %936 = vmatpush.bf16.msra.mxu2 %v1503_v2 }
  0x34   : > { %618 = vmatmul.bf16.vlgmr.msra.gmra.mxu0 %v1265_v20  ;;  %1033 = vmatpush.bf16.msra.mxu3 %v1495_v3  ;;  %p1579_p3 = pnand %p1578_p2, %p1574_p13 }
  0x35   : > { %667 = vmatmul.bf16.vlgmr.msra.gmra.mxu1 %v1269_v21  ;;  %v1871_v21 = vld [vmem:[%s2048_s2] ss:$0 sm:$0xff] }
  0x37   : > { %937 = vmatpush.bf16.msra.mxu2 %v1502_v4 }
  0x38   : > { %1034 = vmatpush.bf16.msra.mxu3 %v1494_v5 }
  0x3b   : > { %938 = vmatpush.bf16.msra.mxu2 %v1501_v6 }
  0x3c   : > { %1035 = vmatpush.bf16.msra.mxu3 %v1493_v11 }
  0x3f   : > { %939 = vmatpush.bf16.msra.mxu2 %v1500_v12 }
  0x40   : > { %1036 = vmatpush.bf16.msra.mxu3 %v1492_v15 }
  0x44   : > { %623 = vmatmul.bf16.gmra.mxu0 %v1273_v26 }
  0x45   : > { %672 = vmatmul.bf16.gmra.mxu1 %v1277_v27 }
  0x54   : > { %628 = vmatmul.bf16.gmra.mxu0 %v1281_v32 }
  0x55   : > { %677 = vmatmul.bf16.gmra.mxu1 %v1285_v33 }
  0x64   : > { %633 = vmatmul.bf16.gmra.mxu0 %v1289_v38 }
  0x65   : > { %682 = vmatmul.bf16.gmra.mxu1 %v1293_v39 }
  0x74   : > { %638 = vmatmul.bf16.gmra.mxu0 %v1297_v44 }
  0x75   : > { %687 = vmatmul.bf16.gmra.mxu1 %v1301_v45 }
  0x84   : > { %643 = vmatmul.bf16.gmra.mxu0 %v1305_v50 }
  0x85   : > { %692 = vmatmul.bf16.gmra.mxu1 %v1309_v51 }
  0x94   : > { %648 = vmatmul.bf16.gmra.mxu0 %v1313_v63 }
  0x95   : > { %697 = vmatmul.bf16.gmra.mxu1 %v1317_v0 }
  0xa4   : > { %653 = vmatmul.bf16.gmra.mxu0 %v1321_v13 }
  0xa5   : > { %702 = vmatmul.bf16.gmra.mxu1 %v1325_v14 }
  0xb1   : > { %v619_v16 = vpop.f32.mrf.mxu0 }
  0xb2   : > { %v668_v17 = vpop.f32.mrf.mxu1 }
  0xb3   : > { %v669_v18 = vadd.f32 %v668_v17, %v619_v16 }
  0xb5   : > { %v708_v20 = vsub.f32 0.0, %v669_v18  ;;  %v784_v22 = vmul.f32 %v1866_v19, %v669_v18 }
  0xb7   : > { %v728_v26 = vmul.f32 %v1871_v21, %v708_v20  ;;  %v804_v31 = vadd.f32 %v1877_v23, %v784_v22 }
  0xb9   : > { %v621_v24 = vpop.f32.mrf.mxu0  ;;  %v748_v34 = vadd.f32 %v1883_v28, %v728_v26  ;;  %v820_v35 = vmax.f32 %v804_v31, 0.0 }
  0xba   : > { %v670_v25 = vpop.f32.mrf.mxu1 }
  0xbb   : > { %v671_v27 = vadd.f32 %v670_v25, %v621_v24  ;;  %v764_v42 = vmax.f32 %v748_v34, 0.0 }
  0xbd   : > { %v709_v29 = vsub.f32 0.0, %v671_v27  ;;  %v785_v30 = vmul.f32 %v1866_v19, %v671_v27 }
  0xbf   : > { %v729_v32 = vmul.f32 %v1871_v21, %v709_v29  ;;  %v805_v33 = vadd.f32 %v1877_v23, %v785_v30 }
  0xc1   : > { %v821_v36 = vmax.f32 %v805_v33, 0.0  ;;  %v749_v37 = vadd.f32 %v1883_v28, %v729_v32  ;;  %v624_v38 = vpop.f32.mrf.mxu0 }
  0xc2   : > { %v673_v39 = vpop.f32.mrf.mxu1 }
  0xc3   : > { %v674_v40 = vadd.f32 %v673_v39, %v624_v38  ;;  %v860_v41 = vpack.c.bf16 %v821_v36, %v820_v35  ;;  %v765_v43 = vmax.f32 %v749_v37, 0.0 }
  0xc5   : > { %940 = vmatmul.bf16.vlgmr.msra.gmra.mxu2 %v860_v41  ;;  %v836_v44 = vpack.c.bf16 %v765_v43, %v764_v42  ;;  %v710_v45 = vsub.f32 0.0, %v674_v40  ;;  %v786_v46 = vmul.f32 %v1866_v19, %v674_v40 }
  0xc7   : > { %1037 = vmatmul.bf16.vlgmr.msra.gmra.mxu3 %v836_v44  ;;  %v730_v49 = vmul.f32 %v1871_v21, %v710_v45  ;;  %v806_v53 = vadd.f32 %v1877_v23, %v786_v46 }
  0xc9   : > { %v626_v47 = vpop.f32.mrf.mxu0  ;;  %v750_v56 = vadd.f32 %v1883_v28, %v730_v49  ;;  %v822_v57 = vmax.f32 %v806_v53, 0.0 }
  0xca   : > { %v675_v48 = vpop.f32.mrf.mxu1 }
  0xcb   : > { %v676_v50 = vadd.f32 %v675_v48, %v626_v47  ;;  %v766_v0 = vmax.f32 %v750_v56, 0.0 }
  0xcd   : > { %v711_v51 = vsub.f32 0.0, %v676_v50  ;;  %v787_v52 = vmul.f32 %v1866_v19, %v676_v50 }
  0xcf   : > { %v731_v54 = vmul.f32 %v1871_v21, %v711_v51  ;;  %v807_v55 = vadd.f32 %v1877_v23, %v787_v52 }
  0xd1   : > { %v823_v58 = vmax.f32 %v807_v55, 0.0  ;;  %v751_v59 = vadd.f32 %v1883_v28, %v731_v54  ;;  %v629_v60 = vpop.f32.mrf.mxu0 }
  0xd2   : > { %v678_v61 = vpop.f32.mrf.mxu1 }
  0xd3   : > { %v679_v62 = vadd.f32 %v678_v61, %v629_v60  ;;  %v861_v63 = vpack.c.bf16 %v823_v58, %v822_v57  ;;  %v767_v1 = vmax.f32 %v751_v59, 0.0 }
  0xd5   : > { %945 = vmatmul.bf16.gmra.mxu2 %v861_v63  ;;  %v837_v2 = vpack.c.bf16 %v767_v1, %v766_v0  ;;  %v712_v3 = vsub.f32 0.0, %v679_v62  ;;  %v788_v4 = vmul.f32 %v1866_v19, %v679_v62 }
  0xd7   : > { %1042 = vmatmul.bf16.gmra.mxu3 %v837_v2  ;;  %v732_v7 = vmul.f32 %v1871_v21, %v712_v3  ;;  %v808_v11 = vadd.f32 %v1877_v23, %v788_v4 }
  0xd9   : > { %v631_v5 = vpop.f32.mrf.mxu0  ;;  %v752_v14 = vadd.f32 %v1883_v28, %v732_v7  ;;  %v824_v15 = vmax.f32 %v808_v11, 0.0 }
  0xda   : > { %v680_v6 = vpop.f32.mrf.mxu1 }
  0xdb   : > { %v681_v8 = vadd.f32 %v680_v6, %v631_v5  ;;  %v768_v25 = vmax.f32 %v752_v14, 0.0 }
  0xdd   : > { %v713_v9 = vsub.f32 0.0, %v681_v8  ;;  %v789_v10 = vmul.f32 %v1866_v19, %v681_v8 }
  0xdf   : > { %v733_v12 = vmul.f32 %v1871_v21, %v713_v9  ;;  %v809_v13 = vadd.f32 %v1877_v23, %v789_v10 }
  0xe1   : > { %v825_v16 = vmax.f32 %v809_v13, 0.0  ;;  %v753_v17 = vadd.f32 %v1883_v28, %v733_v12  ;;  %v634_v18 = vpop.f32.mrf.mxu0 }
  0xe2   : > { %v683_v20 = vpop.f32.mrf.mxu1 }
  0xe3   : > { %v684_v22 = vadd.f32 %v683_v20, %v634_v18  ;;  %v862_v24 = vpack.c.bf16 %v825_v16, %v824_v15  ;;  %v769_v26 = vmax.f32 %v753_v17, 0.0 }
  0xe5   : > { %950 = vmatmul.bf16.gmra.mxu2 %v862_v24  ;;  %v838_v27 = vpack.c.bf16 %v769_v26, %v768_v25  ;;  %v714_v29 = vsub.f32 0.0, %v684_v22  ;;  %v790_v30 = vmul.f32 %v1866_v19, %v684_v22 }
  0xe7   : > { %1047 = vmatmul.bf16.gmra.mxu3 %v838_v27  ;;  %v734_v33 = vmul.f32 %v1871_v21, %v714_v29  ;;  %v810_v37 = vadd.f32 %v1877_v23, %v790_v30 }
  0xe9   : > { %v636_v31 = vpop.f32.mrf.mxu0  ;;  %v754_v40 = vadd.f32 %v1883_v28, %v734_v33  ;;  %v826_v41 = vmax.f32 %v810_v37, 0.0 }
  0xea   : > { %v685_v32 = vpop.f32.mrf.mxu1 }
  0xeb   : > { %v686_v34 = vadd.f32 %v685_v32, %v636_v31  ;;  %v770_v48 = vmax.f32 %v754_v40, 0.0 }
  0xed   : > { %v715_v35 = vsub.f32 0.0, %v686_v34  ;;  %v791_v36 = vmul.f32 %v1866_v19, %v686_v34 }
  0xef   : > { %v735_v38 = vmul.f32 %v1871_v21, %v715_v35  ;;  %v811_v39 = vadd.f32 %v1877_v23, %v791_v36 }
  0xf1   : > { %v827_v42 = vmax.f32 %v811_v39, 0.0  ;;  %v755_v43 = vadd.f32 %v1883_v28, %v735_v38  ;;  %v639_v44 = vpop.f32.mrf.mxu0 }
  0xf2   : > { %v688_v45 = vpop.f32.mrf.mxu1 }
  0xf3   : > { %v689_v46 = vadd.f32 %v688_v45, %v639_v44  ;;  %v863_v47 = vpack.c.bf16 %v827_v42, %v826_v41  ;;  %v771_v49 = vmax.f32 %v755_v43, 0.0 }
  0xf5   : > { %955 = vmatmul.bf16.gmra.mxu2 %v863_v47  ;;  %v839_v50 = vpack.c.bf16 %v771_v49, %v770_v48  ;;  %v716_v51 = vsub.f32 0.0, %v689_v46  ;;  %v792_v52 = vmul.f32 %v1866_v19, %v689_v46 }
  0xf7   : > { %1052 = vmatmul.bf16.gmra.mxu3 %v839_v50  ;;  %v736_v55 = vmul.f32 %v1871_v21, %v716_v51  ;;  %v812_v59 = vadd.f32 %v1877_v23, %v792_v52 }
  0xf9   : > { %v641_v53 = vpop.f32.mrf.mxu0  ;;  %v756_v62 = vadd.f32 %v1883_v28, %v736_v55  ;;  %v828_v63 = vmax.f32 %v812_v59, 0.0 }
  0xfa   : > { %v690_v54 = vpop.f32.mrf.mxu1 }
  0xfb   : > { %v691_v56 = vadd.f32 %v690_v54, %v641_v53  ;;  %v772_v6 = vmax.f32 %v756_v62, 0.0 }
  0xfd   : > { %v717_v57 = vsub.f32 0.0, %v691_v56  ;;  %v793_v58 = vmul.f32 %v1866_v19, %v691_v56 }
  0xff   : > { %v737_v60 = vmul.f32 %v1871_v21, %v717_v57  ;;  %v813_v61 = vadd.f32 %v1877_v23, %v793_v58 }
 0x101   : > { %v829_v0 = vmax.f32 %v813_v61, 0.0  ;;  %v757_v1 = vadd.f32 %v1883_v28, %v737_v60  ;;  %v644_v2 = vpop.f32.mrf.mxu0 }
 0x102   : > { %v693_v3 = vpop.f32.mrf.mxu1 }
 0x103   : > { %v694_v4 = vadd.f32 %v693_v3, %v644_v2  ;;  %v864_v5 = vpack.c.bf16 %v829_v0, %v828_v63  ;;  %v773_v7 = vmax.f32 %v757_v1, 0.0 }
 0x105   : > { %960 = vmatmul.bf16.gmra.mxu2 %v864_v5  ;;  %v840_v8 = vpack.c.bf16 %v773_v7, %v772_v6  ;;  %v718_v9 = vsub.f32 0.0, %v694_v4  ;;  %v794_v10 = vmul.f32 %v1866_v19, %v694_v4 }
 0x107   : > { %1057 = vmatmul.bf16.gmra.mxu3 %v840_v8  ;;  %v738_v13 = vmul.f32 %v1871_v21, %v718_v9  ;;  %v814_v17 = vadd.f32 %v1877_v23, %v794_v10 }
 0x109   : > { %v646_v11 = vpop.f32.mrf.mxu0  ;;  %v758_v22 = vadd.f32 %v1883_v28, %v738_v13  ;;  %v830_v24 = vmax.f32 %v814_v17, 0.0  ;;  %v1114_v13 = vld [vmem:[%s1958_s20] sm:$0xff] }
 0x10a   : > { %v695_v12 = vpop.f32.mrf.mxu1 }
 0x10b   : > { %v696_v14 = vadd.f32 %v695_v12, %v646_v11  ;;  %v774_v32 = vmax.f32 %v758_v22, 0.0  ;;  %v1115_v22 = vld [vmem:[%s1958_s20 + $0x8] sm:$0xff] }
 0x10d   : > { %v719_v15 = vsub.f32 0.0, %v696_v14  ;;  %v795_v16 = vmul.f32 %v1866_v19, %v696_v14 }
 0x10f   : > { %v739_v18 = vmul.f32 %v1871_v21, %v719_v15  ;;  %v815_v20 = vadd.f32 %v1877_v23, %v795_v16 }
 0x111   : > { %v831_v25 = vmax.f32 %v815_v20, 0.0  ;;  %v759_v26 = vadd.f32 %v1883_v28, %v739_v18  ;;  %v649_v27 = vpop.f32.mrf.mxu0 }
 0x112   : > { %v698_v29 = vpop.f32.mrf.mxu1 }
 0x113   : > { %v699_v30 = vadd.f32 %v698_v29, %v649_v27  ;;  %v865_v31 = vpack.c.bf16 %v831_v25, %v830_v24  ;;  %v775_v33 = vmax.f32 %v759_v26, 0.0 }
 0x115   : > { %965 = vmatmul.bf16.gmra.mxu2 %v865_v31  ;;  %v841_v34 = vpack.c.bf16 %v775_v33, %v774_v32  ;;  %v720_v35 = vsub.f32 0.0, %v699_v30  ;;  %v796_v36 = vmul.f32 %v1866_v19, %v699_v30  ;;  %v1116_v31 = vld [vmem:[%s1958_s20 + $0x10] sm:$0xff] }
 0x117   : > { %1062 = vmatmul.bf16.gmra.mxu3 %v841_v34  ;;  %v740_v39 = vmul.f32 %v1871_v21, %v720_v35  ;;  %v816_v43 = vadd.f32 %v1877_v23, %v796_v36 }
 0x119   : > { %v651_v37 = vpop.f32.mrf.mxu0  ;;  %v760_v46 = vadd.f32 %v1883_v28, %v740_v39  ;;  %v832_v47 = vmax.f32 %v816_v43, 0.0 }
 0x11a   : > { %v700_v38 = vpop.f32.mrf.mxu1 }
 0x11b   : > { %v701_v40 = vadd.f32 %v700_v38, %v651_v37  ;;  %v776_v54 = vmax.f32 %v760_v46, 0.0  ;;  %v1117_v38 = vld [vmem:[%s1958_s20 + $0x18] sm:$0xff] }
 0x11d   : > { %v721_v41 = vsub.f32 0.0, %v701_v40  ;;  %v797_v42 = vmul.f32 %v1866_v19, %v701_v40 }
 0x11f   : > { %v741_v44 = vmul.f32 %v1871_v21, %v721_v41  ;;  %v817_v45 = vadd.f32 %v1877_v23, %v797_v42 }
 0x121   : > { %v833_v48 = vmax.f32 %v817_v45, 0.0  ;;  %v761_v49 = vadd.f32 %v1883_v28, %v741_v44  ;;  %v654_v50 = vpop.f32.mrf.mxu0  ;;  %v1118_v45 = vld [vmem:[%s1958_s20 + $0x20] sm:$0xff] }
 0x122   : > { %v703_v51 = vpop.f32.mrf.mxu1 }
 0x123   : > { %v704_v52 = vadd.f32 %v703_v51, %v654_v50  ;;  %v866_v53 = vpack.c.bf16 %v833_v48, %v832_v47  ;;  %v777_v55 = vmax.f32 %v761_v49, 0.0 }
 0x125   : > { %970 = vmatmul.bf16.gmra.mxu2 %v866_v53  ;;  %v842_v56 = vpack.c.bf16 %v777_v55, %v776_v54  ;;  %v722_v57 = vsub.f32 0.0, %v704_v52  ;;  %v798_v58 = vmul.f32 %v1866_v19, %v704_v52  ;;  %v1119_v52 = vld [vmem:[%s1958_s20 + $0x28] sm:$0xff] }
 0x127   : > { %1067 = vmatmul.bf16.gmra.mxu3 %v842_v56  ;;  %v742_v61 = vmul.f32 %v1871_v21, %v722_v57  ;;  %v818_v1 = vadd.f32 %v1877_v23, %v798_v58 }
 0x129   : > { %v656_v59 = vpop.f32.mrf.mxu0  ;;  %v762_v4 = vadd.f32 %v1883_v28, %v742_v61  ;;  %v834_v5 = vmax.f32 %v818_v1, 0.0 }
 0x12a   : > { %v705_v60 = vpop.f32.mrf.mxu1 }
 0x12b   : > { %v706_v62 = vadd.f32 %v705_v60, %v656_v59  ;;  %v778_v9 = vmax.f32 %v762_v4, 0.0  ;;  %v1120_v59 = vld [vmem:[%s1958_s20 + $0x30] sm:$0xff] }
 0x12d   : > { %v723_v63 = vsub.f32 0.0, %v706_v62  ;;  %v799_v0 = vmul.f32 %v1866_v19, %v706_v62 }
 0x12f   : > { %v743_v2 = vmul.f32 %v1871_v21, %v723_v63  ;;  %v819_v3 = vadd.f32 %v1877_v23, %v799_v0  ;;  %v1950_v21 = vld [vmem:[%s2054_s8] ss:$0 sm:$0xff] }
 0x131   : > { %v835_v6 = vmax.f32 %v819_v3, 0.0  ;;  %v763_v7 = vadd.f32 %v1883_v28, %v743_v2  ;;  %v1121_v2 = vld [vmem:[%s1958_s20 + $0x38] sm:$0xff] }
 0x133   : > { %v867_v8 = vpack.c.bf16 %v835_v6, %v834_v5  ;;  %v779_v10 = vmax.f32 %v763_v7, 0.0 }
 0x135   : > { %975 = vmatmul.bf16.gmra.mxu2 %v867_v8  ;;  %v843_v19 = vpack.c.bf16 %v779_v10, %v778_v9  ;;  %v1122_v9 = vld [vmem:[%s1958_s20 + $0x40] sm:$0xff] }
 0x137   : > { %1072 = vmatmul.bf16.gmra.mxu3 %v843_v19 }
 0x148   : > { %v941_v11 = vpop.f32.mrf.mxu2 }
 0x14a   : > { %v1038_v23 = vpop.f32.mrf.mxu3 }
 0x14b   : > { %v1039_v28 = vadd.f32 %v1038_v23, %v941_v11 }
 0x14d   : > { %v1082_v12 = vadd.f32 %v1950_v21, %v1039_v28 }
 0x14f   : > { %v1098_v14 = vmax.f32 %v1082_v12, 0.0 }
 0x150   : > { %v943_v15 = vpop.f32.mrf.mxu2 }
 0x151   : > { %v1130_v16 = vadd.f32 %v1114_v13, %v1098_v14  ;;  %v1123_v13 = vld [vmem:[%s1958_s20 + $0x48] sm:$0xff] }
 0x152   : > { %v1040_v17 = vpop.f32.mrf.mxu3 }
 0x153   : > { %1146 = vst [vmem:[%s1964_s29] sm:$0xff] %v1130_v16  ;;  %v1041_v18 = vadd.f32 %v1040_v17, %v943_v15 }
 0x155   : > { %v1083_v20 = vadd.f32 %v1950_v21, %v1041_v18 }
 0x157   : > { %v1099_v24 = vmax.f32 %v1083_v20, 0.0 }
 0x158   : > { %v946_v25 = vpop.f32.mrf.mxu2 }
 0x159   : > { %v1131_v26 = vadd.f32 %v1115_v22, %v1099_v24  ;;  %v1124_v22 = vld [vmem:[%s1958_s20 + $0x50] sm:$0xff] }
 0x15a   : > { %v1043_v27 = vpop.f32.mrf.mxu3 }
 0x15b   : > { %1147 = vst [vmem:[%s1964_s29 + $0x8] sm:$0xff] %v1131_v26  ;;  %v1044_v29 = vadd.f32 %v1043_v27, %v946_v25 }
 0x15d   : > { %v1084_v30 = vadd.f32 %v1950_v21, %v1044_v29 }
 0x15f   : > { %v1100_v32 = vmax.f32 %v1084_v30, 0.0 }
 0x160   : > { %v948_v33 = vpop.f32.mrf.mxu2 }
 0x161   : > { %v1132_v34 = vadd.f32 %v1116_v31, %v1100_v32  ;;  %v1125_v31 = vld [vmem:[%s1958_s20 + $0x58] sm:$0xff] }
 0x162   : > { %v1045_v35 = vpop.f32.mrf.mxu3 }
 0x163   : > { %1148 = vst [vmem:[%s1964_s29 + $0x10] sm:$0xff] %v1132_v34  ;;  %v1046_v36 = vadd.f32 %v1045_v35, %v948_v33 }
 0x165   : > { %v1085_v37 = vadd.f32 %v1950_v21, %v1046_v36 }
 0x167   : > { %v1101_v39 = vmax.f32 %v1085_v37, 0.0 }
 0x168   : > { %v951_v40 = vpop.f32.mrf.mxu2 }
 0x169   : > { %v1133_v41 = vadd.f32 %v1117_v38, %v1101_v39  ;;  %v1126_v38 = vld [vmem:[%s1958_s20 + $0x60] sm:$0xff] }
 0x16a   : > { %v1048_v42 = vpop.f32.mrf.mxu3 }
 0x16b   : > { %1149 = vst [vmem:[%s1964_s29 + $0x18] sm:$0xff] %v1133_v41  ;;  %v1049_v43 = vadd.f32 %v1048_v42, %v951_v40 }
 0x16d   : > { %v1086_v44 = vadd.f32 %v1950_v21, %v1049_v43 }
 0x16f   : > { %v1102_v46 = vmax.f32 %v1086_v44, 0.0 }
 0x170   : > { %v953_v47 = vpop.f32.mrf.mxu2 }
 0x171   : > { %v1134_v48 = vadd.f32 %v1118_v45, %v1102_v46  ;;  %v1127_v45 = vld [vmem:[%s1958_s20 + $0x68] sm:$0xff] }
 0x172   : > { %v1050_v49 = vpop.f32.mrf.mxu3 }
 0x173   : > { %1150 = vst [vmem:[%s1964_s29 + $0x20] sm:$0xff] %v1134_v48  ;;  %v1051_v50 = vadd.f32 %v1050_v49, %v953_v47 }
 0x175   : > { %v1087_v51 = vadd.f32 %v1950_v21, %v1051_v50 }
 0x177   : > { %v1103_v53 = vmax.f32 %v1087_v51, 0.0 }
 0x178   : > { %v956_v54 = vpop.f32.mrf.mxu2 }
 0x179   : > { %v1135_v55 = vadd.f32 %v1119_v52, %v1103_v53  ;;  %v1128_v52 = vld [vmem:[%s1958_s20 + $0x70] sm:$0xff] }
 0x17a   : > { %v1053_v56 = vpop.f32.mrf.mxu3 }
 0x17b   : > { %1151 = vst [vmem:[%s1964_s29 + $0x28] sm:$0xff] %v1135_v55  ;;  %v1054_v57 = vadd.f32 %v1053_v56, %v956_v54 }
 0x17d   : > { %v1088_v58 = vadd.f32 %v1950_v21, %v1054_v57 }
 0x17f   : > { %v1104_v60 = vmax.f32 %v1088_v58, 0.0 }
 0x180   : > { %v958_v61 = vpop.f32.mrf.mxu2 }
 0x181   : > { %v1136_v62 = vadd.f32 %v1120_v59, %v1104_v60  ;;  %v1129_v59 = vld [vmem:[%s1958_s20 + $0x78] sm:$0xff] }
 0x182   : > { %v1055_v63 = vpop.f32.mrf.mxu3 }
 0x183   : > { %1152 = vst [vmem:[%s1964_s29 + $0x30] sm:$0xff] %v1136_v62  ;;  %v1056_v0 = vadd.f32 %v1055_v63, %v958_v61 }
 0x185   : > { %v1089_v1 = vadd.f32 %v1950_v21, %v1056_v0 }
 0x187   : > { %v1105_v3 = vmax.f32 %v1089_v1, 0.0 }
 0x188   : > { %v961_v4 = vpop.f32.mrf.mxu2 }
 0x189   : > { %v1137_v5 = vadd.f32 %v1121_v2, %v1105_v3 }
 0x18a   : > { %v1058_v6 = vpop.f32.mrf.mxu3 }
 0x18b   : > { %1153 = vst [vmem:[%s1964_s29 + $0x38] sm:$0xff] %v1137_v5  ;;  %v1059_v7 = vadd.f32 %v1058_v6, %v961_v4 }
 0x18d   : > { %v1090_v8 = vadd.f32 %v1950_v21, %v1059_v7 }
 0x18f   : > { %v1106_v10 = vmax.f32 %v1090_v8, 0.0 }
 0x190   : > { %v963_v19 = vpop.f32.mrf.mxu2 }
 0x191   : > { %v1138_v11 = vadd.f32 %v1122_v9, %v1106_v10 }
 0x192   : > { %v1060_v23 = vpop.f32.mrf.mxu3 }
 0x193   : > { %1154 = vst [vmem:[%s1964_s29 + $0x40] sm:$0xff] %v1138_v11  ;;  %v1061_v28 = vadd.f32 %v1060_v23, %v963_v19 }
 0x195   : > { %v1091_v12 = vadd.f32 %v1950_v21, %v1061_v28 }
 0x197   : > { %v1107_v14 = vmax.f32 %v1091_v12, 0.0 }
 0x198   : > { %v966_v15 = vpop.f32.mrf.mxu2 }
 0x199   : > { %v1139_v16 = vadd.f32 %v1123_v13, %v1107_v14 }
 0x19a   : > { %v1063_v17 = vpop.f32.mrf.mxu3 }
 0x19b   : > { %1155 = vst [vmem:[%s1964_s29 + $0x48] sm:$0xff] %v1139_v16  ;;  %v1064_v18 = vadd.f32 %v1063_v17, %v966_v15 }
 0x19d   : > { %v1092_v20 = vadd.f32 %v1950_v21, %v1064_v18 }
 0x19f   : > { %v1108_v24 = vmax.f32 %v1092_v20, 0.0 }
 0x1a0   : > { %v968_v25 = vpop.f32.mrf.mxu2 }
 0x1a1   : > { %v1140_v26 = vadd.f32 %v1124_v22, %v1108_v24 }
 0x1a2   : > { %v1065_v27 = vpop.f32.mrf.mxu3 }
 0x1a3   : > { %1156 = vst [vmem:[%s1964_s29 + $0x50] sm:$0xff] %v1140_v26  ;;  %v1066_v29 = vadd.f32 %v1065_v27, %v968_v25 }
 0x1a5   : > { %v1093_v30 = vadd.f32 %v1950_v21, %v1066_v29 }
 0x1a7   : > { %v1109_v32 = vmax.f32 %v1093_v30, 0.0 }
 0x1a8   : > { %v971_v33 = vpop.f32.mrf.mxu2 }
 0x1a9   : > { %v1141_v34 = vadd.f32 %v1125_v31, %v1109_v32 }
 0x1aa   : > { %v1068_v35 = vpop.f32.mrf.mxu3 }
 0x1ab   : > { %1157 = vst [vmem:[%s1964_s29 + $0x58] sm:$0xff] %v1141_v34  ;;  %v1069_v36 = vadd.f32 %v1068_v35, %v971_v33 }
 0x1ad   : > { %v1094_v37 = vadd.f32 %v1950_v21, %v1069_v36 }
 0x1af   : > { %v1110_v39 = vmax.f32 %v1094_v37, 0.0 }
 0x1b0   : > { %v973_v40 = vpop.f32.mrf.mxu2 }
 0x1b1   : > { %v1142_v41 = vadd.f32 %v1126_v38, %v1110_v39 }
 0x1b2   : > { %v1070_v42 = vpop.f32.mrf.mxu3 }
 0x1b3   : > { %1158 = vst [vmem:[%s1964_s29 + $0x60] sm:$0xff] %v1142_v41  ;;  %v1071_v43 = vadd.f32 %v1070_v42, %v973_v40 }
 0x1b5   : > { %v1095_v44 = vadd.f32 %v1950_v21, %v1071_v43 }
 0x1b7   : > { %v1111_v46 = vmax.f32 %v1095_v44, 0.0 }
 0x1b8   : > { %v976_v47 = vpop.f32.mrf.mxu2 }
 0x1b9   : > { %v1143_v48 = vadd.f32 %v1127_v45, %v1111_v46 }
 0x1ba   : > { %v1073_v49 = vpop.f32.mrf.mxu3 }
 0x1bb   : > { %1159 = vst [vmem:[%s1964_s29 + $0x68] sm:$0xff] %v1143_v48  ;;  %v1074_v50 = vadd.f32 %v1073_v49, %v976_v47 }
 0x1bd   : > { %v1096_v51 = vadd.f32 %v1950_v21, %v1074_v50 }
 0x1bf   : > { %v1112_v53 = vmax.f32 %v1096_v51, 0.0 }
 0x1c0   : > { %v978_v55 = vpop.f32.mrf.mxu2 }
 0x1c1   : > { %v1144_v54 = vadd.f32 %v1128_v52, %v1112_v53 }
 0x1c2   : > { %v1075_v56 = vpop.f32.mrf.mxu3 }
 0x1c3   : > { %1160 = vst [vmem:[%s1964_s29 + $0x70] sm:$0xff] %v1144_v54  ;;  %v1076_v57 = vadd.f32 %v1075_v56, %v978_v55 }
 0x1c5   : > { %v1097_v58 = vadd.f32 %v1950_v21, %v1076_v57 }
 0x1c7   : > { %v1113_v60 = vmax.f32 %v1097_v58, 0.0 }
 0x1c9   : > { %v1145_v61 = vadd.f32 %v1129_v59, %v1113_v60 }
 0x1cb   : > { %1161 = vst [vmem:[%s1964_s29 + $0x78] sm:$0xff] %v1145_v61 }
 0x1cc   : > { %1582 = shalt.err (!%p1579_p3)
}
 0x1cd   : > { %s1619_s11 = smov 128   ;;  %s1620_s29 = smov 8  }
 0x1ce   : > { %1509 = dma.vmem_to_hbm [thread:$0]  (%p1714_p5), %s1176_s22, 2048, %s1178_s21, %s1163_s17, %s1619_s11, %s1619_s11, %s1620_s29  }
 0x1cf PF: > { %p1515_p4 = scmp.ge.s32.totalorder %s1617_s16, 2  ;;  %s1192_s30 = sand.u32 1, %s1605_s13  }
 0x1d0   : > { %s1193_s25 = scalar_lea.sflag [#allocation3], %s1192_s30 }
 0x1d1   : > { %p1512_p7 = pnand %p1515_p4, %p1718_p6 }
 0x1d3   : > { %p1513_p8 = pneg %p1512_p7 }
 0x1d5   : > { %1600 = dma.done.wait (%p1513_p8), %s1193_s25, 2048  }
 0x1d6   : > { %1602 = vsyncadd (%p1513_p8), %s1193_s25, 4294965248  ;;  %s2062_s12 = sld [smem:[#allocation5_spill]]  ;;  %p20_p9 = scmp.ge.s32.totalorder %s1701_s19, 6  }
 0x1d7   : > { %s2063_s13 = smov %s1609_s14  ;;  %s2064_s14 = smov %s1613_s15 }
 0x1d8   : > { %s2066_s16 = smov %s1701_s19  ;;  %22 = sbr.rel (!%p20_p9) target bundleno = 3 (0x3), region = 98 }
 0x1dc   : > { %s2065_s15 = smov %s2062_s12 }
 0x1dd   :  { %1199 = vsyncpa [#allocation3], 1 }
 0x1de   :  { %1201 = vsyncpa [#allocation3 + $0x1], 1 }

</bundles_post_ra>
